<compile_context>
chip_gen: v7x
topology: tpu7x:2x2x1
jax: 0.10.0
libtpu: 0.0.40
codegen_flags: <defaults>
</compile_context>

<pallas_src>
import functools

import numpy as np
import jax
import jax.numpy as jnp
from jax.experimental import pallas as pl
from jax.experimental.pallas import tpu as pltpu


def _make_mus_sigmas(kernel_num, sigma, exact_sigma):
    """Same mu/sigma schedule as KNRM._get_kernels_layers (static Python)."""
    mus = [1.0]
    if kernel_num > 1:
        bin_size = 2.0 / (kernel_num - 1)
        mus.append(1 - bin_size / 2)
        for i in range(1, kernel_num - 1):
            mus.append(mus[i] - bin_size)
    mus = list(reversed(mus))
    sigmas = [sigma] * (kernel_num - 1) + [exact_sigma]
    return tuple(float(m) for m in mus), tuple(float(s) for s in sigmas)


def _knrm_pool_kernel(q_ref, d_ref, feat_ref, *, mus, inv_two_sig2):
    """One batch block: cosine matching matrix -> Gaussian kernel pooling.

    `mus` / `inv_two_sig2` are tuples of Python floats: they inline as scalar
    immediates in each unrolled iteration (no captured constant arrays — the
    previous compile failure), and reducing per kernel keeps only `mm` plus
    one (TB, Lq, Ld)-sized temp live instead of a (TB, K, Lq, Ld) broadcast.
    """
    q = q_ref[...].astype(jnp.float32)   # (TB, Lq, E)
    d = d_ref[...].astype(jnp.float32)   # (TB, Ld, E)

    # L2-normalize along the embedding dim (torch: x / (||x|| + 1e-13)).
    # Exact sqrt/divide on purpose: the sigma=1e-3 exact-match kernel cannot
    # tolerate approx-reciprocal / rsqrt error in the cosine.
    qn = q / (jnp.sqrt(jnp.sum(q * q, axis=-1, keepdims=True)) + 1e-13)
    dn = d / (jnp.sqrt(jnp.sum(d * d, axis=-1, keepdims=True)) + 1e-13)

    # Batched matching matrix: contract the embedding dim of both operands
    # directly ('bqe,bke->bqk') — no wrapper-side doc transpose; Mosaic handles
    # the RHS layout in VMEM and Ld lands on the 128-lane axis for pooling.
    # HIGHEST precision kept (see header): DEFAULT bf16 breaks the exact-match
    # kernel, and Mosaic does not lower Precision.HIGH.
    mm = jnp.einsum("bqe,bke->bqk", qn, dn,
                    preferred_element_type=jnp.float32,
                    precision=jax.lax.Precision.HIGHEST)   # (TB, Lq, Ld)

    # TODO(synk): interleave per-sub-chunk matmuls with the pooling loop so the
    # MXU work hides under the EUP-bound exp chain (worth ~matmul fraction of
    # step time at production sizes).
    cols = []
    for mu, inv in zip(mus, inv_two_sig2):   # static unroll over K (=21) kernels
        diff = mm - mu
        # exp argument stays f32 (v5e has no bf16 EUP; sigma=0.1/0.001 kernels
        # need it).  Lane reduce over Ld — keep Ld a multiple of 128 at
        # production sizes so the EUP/VPU lanes are fully used.
        s = jnp.sum(jnp.exp(-(diff * diff) * inv), axis=-1)             # (TB, Lq)
        # log(1+s) == log1p(s) to f32 rounding for the O(1..10) sums seen here;
        # log(1+x) is used because it lowers unconditionally in Mosaic.
        cols.append(jnp.sum(jnp.log(1.0 + s), axis=-1, keepdims=True))  # (TB, 1)
    feat_ref[...] = jnp.concatenate(cols, axis=-1)                      # (TB, K)


def _vmem_limit_bytes(tb, Lq, Ld, E, K):
    """Scoped-VMEM request for one batch block; None -> keep compiler default."""
    blk = 4 * (tb * Lq * E + tb * Ld * E + tb * K)   # f32 input/output blocks
    tmp = 4 * tb * Lq * Ld * 3                       # mm + per-kernel temporaries
    need = 2 * blk + tmp + (2 << 20)                 # double-buffered IO + slack
    if need <= (16 << 20):                           # fits every gen's default
        return None
    try:   # leave headroom below physical VMEM (64 MiB/TC on v7x, 128 MiB v5e/v6e)
        phys = getattr(pltpu.get_tpu_info(), "vmem_capacity_bytes", 64 << 20)
    except Exception:
        phys = 64 << 20
    return int(min(need, int(phys * 0.85)))


def knrm_pool_features(q_emb, d_emb, mus, sigmas, *, block_b=128):
    """q_emb (B, Lq, E) f32, d_emb (B, Ld, E) f32 -> pooled features (B, K) f32."""
    B, Lq, E = q_emb.shape
    _, Ld, _ = d_emb.shape
    K = len(mus)
    inv_two_sig2 = tuple(1.0 / (2.0 * float(s) * float(s)) for s in sigmas)

    # Batch-block sizing: biggest block that fits, sublane-aligned when the
    # grid has >1 step, and split into >=2 steps when the batch allows it so
    # the "parallel" axis can shard across v7x's two TensorCores.
    tb = min(block_b, B)
    if tb < B:
        tb = min(B, ((tb + 7) // 8) * 8)            # keep blocked stores unmasked
    if tb >= B and B >= 16:
        tb = max(8, ((B // 2) // 8) * 8)            # force >=2 grid steps
    n_blocks = pl.cdiv(B, tb)
    bp = n_blocks * tb
    if bp != B:  # pad batch to a whole number of blocks; padded rows sliced off
        q_emb = jnp.pad(q_emb, ((0, bp - B), (0, 0), (0, 0)))
        d_emb = jnp.pad(d_emb, ((0, bp - B), (0, 0), (0, 0)))

    kernel = functools.partial(
        _knrm_pool_kernel,
        mus=tuple(float(m) for m in mus),
        inv_two_sig2=inv_two_sig2)

    feats = pl.pallas_call(
        kernel,
        out_shape=jax.ShapeDtypeStruct((bp, K), jnp.float32),
        grid=(n_blocks,),
        in_specs=[
            pl.BlockSpec((tb, Lq, E), lambda b: (b, 0, 0)),
            pl.BlockSpec((tb, Ld, E), lambda b: (b, 0, 0)),
        ],
        out_specs=pl.BlockSpec((tb, K), lambda b: (b, 0)),
        compiler_params=pltpu.CompilerParams(
            dimension_semantics=("parallel",),
            vmem_limit_bytes=_vmem_limit_bytes(tb, Lq, Ld, E, K)),
    )(q_emb, d_emb)
    return feats[:B]


class KNRM:
    """JAX/Pallas port of the PyTorch KNRM module (deterministic init)."""

    def __init__(self, embedding_matrix, kernel_num=21, sigma=0.1,
                 exact_sigma=0.001, out_layers=(10, 5), key=None):
        self.embeddings = jnp.asarray(embedding_matrix, jnp.float32)
        self.kernel_num = kernel_num
        self.mus, self.sigmas = _make_mus_sigmas(kernel_num, sigma, exact_sigma)

        # MLP params, PyTorch-Linear-style uniform(-1/sqrt(fan_in), ...) init.
        if key is None:
            key = jax.random.PRNGKey(0)
        dims = [kernel_num] + list(out_layers) + [1]
        keys = jax.random.split(key, 2 * (len(dims) - 1))
        params = []
        for i in range(len(dims) - 1):
            fan_in, fan_out = dims[i], dims[i + 1]
            bound = 1.0 / float(np.sqrt(fan_in))
            w = jax.random.uniform(keys[2 * i], (fan_in, fan_out),
                                   jnp.float32, -bound, bound)
            b = jax.random.uniform(keys[2 * i + 1], (1, fan_out),
                                   jnp.float32, -bound, bound)
            params.extend([w, b])
        self.params = tuple(params)  # (w1, b1, w2, b2, w3, b3)

    # Hoisted MLP (shared by kernel path and reference): three tiny matmuls,
    # far below MXU granularity, so they run as plain XLA ops on (B, K).
    def _mlp(self, feats):
        w1, b1, w2, b2, w3, b3 = self.params
        hp = jax.lax.Precision.HIGHEST
        h = jnp.maximum(jnp.dot(feats, w1, precision=hp) + b1, 0.0)
        h = jnp.maximum(jnp.dot(h, w2, precision=hp) + b2, 0.0)
        return jnp.dot(h, w3, precision=hp) + b3

    # Embedding lookup stays as XLA gather glue at toy sizes.
    # TODO(synk): for production B/L/E, fuse the gather into the kernel (token
    # ids via PrefetchScalarGridSpec scalar-prefetch + pl.ANY embedding table
    # with per-row DMA) to roughly halve HBM traffic.
    def predict(self, inputs):
        q_emb = jnp.take(self.embeddings, inputs["query"], axis=0)     # (B, Lq, E)
        d_emb = jnp.take(self.embeddings, inputs["document"], axis=0)  # (B, Ld, E)
        feats = knrm_pool_features(q_emb, d_emb, self.mus, self.sigmas)
        return self._mlp(feats)

    def forward(self, input_1, input_2):
        return jax.nn.sigmoid(self.predict(input_1) - self.predict(input_2))

    # --- pure-JAX reference for correctness checking
    def _predict_ref(self, inputs):
        q_emb = jnp.take(self.embeddings, inputs["query"], axis=0)
        d_emb = jnp.take(self.embeddings, inputs["document"], axis=0)
        qn = q_emb / (jnp.linalg.norm(q_emb, axis=-1, keepdims=True) + 1e-13)
        dn = d_emb / (jnp.linalg.norm(d_emb, axis=-1, keepdims=True) + 1e-13)
        mm = jnp.einsum("bqe,bke->bqk", qn, dn, precision="highest")
        feats = []
        for mu, sg in zip(self.mus, self.sigmas):
            phi = jnp.exp(-((mm - mu) ** 2) / (2.0 * sg * sg))
            feats.append(jnp.sum(jnp.log1p(jnp.sum(phi, axis=-1)), axis=-1))
        f = jnp.stack(feats, axis=1)
        return self._mlp(f)

    def forward_ref(self, input_1, input_2):
        return jax.nn.sigmoid(self._predict_ref(input_1) -
                              self._predict_ref(input_2))


if __name__ == "__main__":
    key = jax.random.PRNGKey(0)
    k_emb, k_q1, k_d1, k_q2, k_d2, k_mlp = jax.random.split(key, 6)

    vocab, emb_dim = 50, 32
    batch, len_q, len_d = 2, 8, 12

    embedding_matrix = jax.random.normal(k_emb, (vocab, emb_dim), jnp.float32)
    embedding_matrix = embedding_matrix.at[0].set(0.0)  # padding_idx=0

    q1 = jax.random.randint(k_q1, (batch, len_q), 0, vocab, jnp.int32)
    d1 = jax.random.randint(k_d1, (batch, len_d), 0, vocab, jnp.int32)
    q2 = jax.random.randint(k_q2, (batch, len_q), 0, vocab, jnp.int32)
    d2 = jax.random.randint(k_d2, (batch, len_d), 0, vocab, jnp.int32)

    model = KNRM(embedding_matrix, kernel_num=21, sigma=0.1,
                 exact_sigma=0.001, out_layers=(10, 5), key=k_mlp)

    input_1 = {"query": q1, "document": d1}
    input_2 = {"query": q2, "document": d2}

    out = model.forward(input_1, input_2)
    out = jax.block_until_ready(out)

    ref = jax.block_until_ready(model.forward_ref(input_1, input_2))
    np.testing.assert_allclose(np.asarray(out), np.asarray(ref),
                               rtol=1e-4, atol=1e-4)

    print("KERNEL_OK")
</pallas_src>

<mosaic_0001>
module attributes {stable_mosaic.version = 11 : i64} {
  func.func @_knrm_pool_kernel(%arg0: i32, %arg1: memref<2x8x32xf32, #tpu.memory_space<vmem>>, %arg2: memref<2x12x32xf32, #tpu.memory_space<vmem>>, %arg3: memref<2x21xf32, #tpu.memory_space<vmem>>) attributes {dimension_semantics = [#tpu.dimension_semantics<parallel>], iteration_bounds = array<i64: 1>, scalar_prefetch = 0 : i64, scratch_operands = 0 : i64, tpu.core_type = #tpu.core_type<tc>, window_params = [{transform_indices = @transform_0, window_bounds = array<i64: 2, 8, 32>}, {transform_indices = @transform_1, window_bounds = array<i64: 2, 12, 32>}, {transform_indices = @transform_2, window_bounds = array<i64: 2, 21>}]} {
    %c0 = arith.constant 0 : index
    %c0_0 = arith.constant 0 : index
    %c0_1 = arith.constant 0 : index
    %0 = vector.load %arg1[%c0, %c0_0, %c0_1] : memref<2x8x32xf32, #tpu.memory_space<vmem>>, vector<2x8x32xf32>
    %c0_2 = arith.constant 0 : index
    %c0_3 = arith.constant 0 : index
    %c0_4 = arith.constant 0 : index
    %1 = vector.load %arg2[%c0_2, %c0_3, %c0_4] : memref<2x12x32xf32, #tpu.memory_space<vmem>>, vector<2x12x32xf32>
    %2 = arith.mulf %0, %0 : vector<2x8x32xf32>
    %cst = arith.constant dense<0.000000e+00> : vector<2x8xf32>
    %3 = vector.multi_reduction <add>, %2, %cst [2] : vector<2x8x32xf32> to vector<2x8xf32>
    %4 = vector.shape_cast %3 : vector<2x8xf32> to vector<2x8x1xf32>
    %5 = math.sqrt %4 : vector<2x8x1xf32>
    %cst_5 = arith.constant 9.99999982E-14 : f32
    %6 = vector.broadcast %cst_5 : f32 to vector<2x8x1xf32>
    %7 = arith.addf %5, %6 : vector<2x8x1xf32>
    %8 = vector.broadcast %7 : vector<2x8x1xf32> to vector<2x8x32xf32>
    %9 = arith.divf %0, %8 : vector<2x8x32xf32>
    %10 = arith.mulf %1, %1 : vector<2x12x32xf32>
    %cst_6 = arith.constant dense<0.000000e+00> : vector<2x12xf32>
    %11 = vector.multi_reduction <add>, %10, %cst_6 [2] : vector<2x12x32xf32> to vector<2x12xf32>
    %12 = vector.shape_cast %11 : vector<2x12xf32> to vector<2x12x1xf32>
    %13 = math.sqrt %12 : vector<2x12x1xf32>
    %cst_7 = arith.constant 9.99999982E-14 : f32
    %14 = vector.broadcast %cst_7 : f32 to vector<2x12x1xf32>
    %15 = arith.addf %13, %14 : vector<2x12x1xf32>
    %16 = vector.broadcast %15 : vector<2x12x1xf32> to vector<2x12x32xf32>
    %17 = arith.divf %1, %16 : vector<2x12x32xf32>
    "tpu.trace_start"() <{level = 10 : i32, message = "bqe,bke->bqk"}> : () -> ()
    %cst_8 = arith.constant dense<0.000000e+00> : vector<2x8x12xf32>
    %18 = tpu.matmul %9, %17, %cst_8 {dimension_numbers = #tpu.dot_dimension_numbers<[2], [2], [1], [1], [0, 0, 0, 1, 1, 1], [0], [0]>, precision = #tpu.contract_precision<fp32>} : vector<2x8x32xf32>, vector<2x12x32xf32>, vector<2x8x12xf32> -> vector<2x8x12xf32>
    "tpu.trace_stop"() : () -> ()
    %cst_9 = arith.constant -0.949999988 : f32
    %19 = vector.broadcast %cst_9 : f32 to vector<2x8x12xf32>
    %20 = arith.subf %18, %19 : vector<2x8x12xf32>
    %21 = arith.mulf %20, %20 : vector<2x8x12xf32>
    %cst_10 = arith.constant 0.000000e+00 : f32
    %22 = vector.broadcast %cst_10 : f32 to vector<2x8x12xf32>
    %23 = arith.subf %22, %21 : vector<2x8x12xf32>
    %cst_11 = arith.constant 5.000000e+01 : f32
    %24 = vector.broadcast %cst_11 : f32 to vector<2x8x12xf32>
    %25 = arith.mulf %23, %24 : vector<2x8x12xf32>
    %26 = math.exp %25 : vector<2x8x12xf32>
    %cst_12 = arith.constant dense<0.000000e+00> : vector<2x8xf32>
    %27 = vector.multi_reduction <add>, %26, %cst_12 [2] : vector<2x8x12xf32> to vector<2x8xf32>
    %cst_13 = arith.constant 1.000000e+00 : f32
    %28 = vector.broadcast %cst_13 : f32 to vector<2x8xf32>
    %29 = arith.addf %28, %27 : vector<2x8xf32>
    %30 = math.log %29 : vector<2x8xf32>
    %cst_14 = arith.constant dense<0.000000e+00> : vector<2xf32>
    %31 = vector.multi_reduction <add>, %30, %cst_14 [1] : vector<2x8xf32> to vector<2xf32>
    %32 = vector.shape_cast %31 : vector<2xf32> to vector<2x1xf32>
    %cst_15 = arith.constant -8.500000e-01 : f32
    %33 = vector.broadcast %cst_15 : f32 to vector<2x8x12xf32>
    %34 = arith.subf %18, %33 : vector<2x8x12xf32>
    %35 = arith.mulf %34, %34 : vector<2x8x12xf32>
    %cst_16 = arith.constant 0.000000e+00 : f32
    %36 = vector.broadcast %cst_16 : f32 to vector<2x8x12xf32>
    %37 = arith.subf %36, %35 : vector<2x8x12xf32>
    %cst_17 = arith.constant 5.000000e+01 : f32
    %38 = vector.broadcast %cst_17 : f32 to vector<2x8x12xf32>
    %39 = arith.mulf %37, %38 : vector<2x8x12xf32>
    %40 = math.exp %39 : vector<2x8x12xf32>
    %cst_18 = arith.constant dense<0.000000e+00> : vector<2x8xf32>
    %41 = vector.multi_reduction <add>, %40, %cst_18 [2] : vector<2x8x12xf32> to vector<2x8xf32>
    %cst_19 = arith.constant 1.000000e+00 : f32
    %42 = vector.broadcast %cst_19 : f32 to vector<2x8xf32>
    %43 = arith.addf %42, %41 : vector<2x8xf32>
    %44 = math.log %43 : vector<2x8xf32>
    %cst_20 = arith.constant dense<0.000000e+00> : vector<2xf32>
    %45 = vector.multi_reduction <add>, %44, %cst_20 [1] : vector<2x8xf32> to vector<2xf32>
    %46 = vector.shape_cast %45 : vector<2xf32> to vector<2x1xf32>
    %cst_21 = arith.constant -7.500000e-01 : f32
    %47 = vector.broadcast %cst_21 : f32 to vector<2x8x12xf32>
    %48 = arith.subf %18, %47 : vector<2x8x12xf32>
    %49 = arith.mulf %48, %48 : vector<2x8x12xf32>
    %cst_22 = arith.constant 0.000000e+00 : f32
    %50 = vector.broadcast %cst_22 : f32 to vector<2x8x12xf32>
    %51 = arith.subf %50, %49 : vector<2x8x12xf32>
    %cst_23 = arith.constant 5.000000e+01 : f32
    %52 = vector.broadcast %cst_23 : f32 to vector<2x8x12xf32>
    %53 = arith.mulf %51, %52 : vector<2x8x12xf32>
    %54 = math.exp %53 : vector<2x8x12xf32>
    %cst_24 = arith.constant dense<0.000000e+00> : vector<2x8xf32>
    %55 = vector.multi_reduction <add>, %54, %cst_24 [2] : vector<2x8x12xf32> to vector<2x8xf32>
    %cst_25 = arith.constant 1.000000e+00 : f32
    %56 = vector.broadcast %cst_25 : f32 to vector<2x8xf32>
    %57 = arith.addf %56, %55 : vector<2x8xf32>
    %58 = math.log %57 : vector<2x8xf32>
    %cst_26 = arith.constant dense<0.000000e+00> : vector<2xf32>
    %59 = vector.multi_reduction <add>, %58, %cst_26 [1] : vector<2x8xf32> to vector<2xf32>
    %60 = vector.shape_cast %59 : vector<2xf32> to vector<2x1xf32>
    %cst_27 = arith.constant -6.500000e-01 : f32
    %61 = vector.broadcast %cst_27 : f32 to vector<2x8x12xf32>
    %62 = arith.subf %18, %61 : vector<2x8x12xf32>
    %63 = arith.mulf %62, %62 : vector<2x8x12xf32>
    %cst_28 = arith.constant 0.000000e+00 : f32
    %64 = vector.broadcast %cst_28 : f32 to vector<2x8x12xf32>
    %65 = arith.subf %64, %63 : vector<2x8x12xf32>
    %cst_29 = arith.constant 5.000000e+01 : f32
    %66 = vector.broadcast %cst_29 : f32 to vector<2x8x12xf32>
    %67 = arith.mulf %65, %66 : vector<2x8x12xf32>
    %68 = math.exp %67 : vector<2x8x12xf32>
    %cst_30 = arith.constant dense<0.000000e+00> : vector<2x8xf32>
    %69 = vector.multi_reduction <add>, %68, %cst_30 [2] : vector<2x8x12xf32> to vector<2x8xf32>
    %cst_31 = arith.constant 1.000000e+00 : f32
    %70 = vector.broadcast %cst_31 : f32 to vector<2x8xf32>
    %71 = arith.addf %70, %69 : vector<2x8xf32>
    %72 = math.log %71 : vector<2x8xf32>
    %cst_32 = arith.constant dense<0.000000e+00> : vector<2xf32>
    %73 = vector.multi_reduction <add>, %72, %cst_32 [1] : vector<2x8xf32> to vector<2xf32>
    %74 = vector.shape_cast %73 : vector<2xf32> to vector<2x1xf32>
    %cst_33 = arith.constant -5.500000e-01 : f32
    %75 = vector.broadcast %cst_33 : f32 to vector<2x8x12xf32>
    %76 = arith.subf %18, %75 : vector<2x8x12xf32>
    %77 = arith.mulf %76, %76 : vector<2x8x12xf32>
    %cst_34 = arith.constant 0.000000e+00 : f32
    %78 = vector.broadcast %cst_34 : f32 to vector<2x8x12xf32>
    %79 = arith.subf %78, %77 : vector<2x8x12xf32>
    %cst_35 = arith.constant 5.000000e+01 : f32
    %80 = vector.broadcast %cst_35 : f32 to vector<2x8x12xf32>
    %81 = arith.mulf %79, %80 : vector<2x8x12xf32>
    %82 = math.exp %81 : vector<2x8x12xf32>
    %cst_36 = arith.constant dense<0.000000e+00> : vector<2x8xf32>
    %83 = vector.multi_reduction <add>, %82, %cst_36 [2] : vector<2x8x12xf32> to vector<2x8xf32>
    %cst_37 = arith.constant 1.000000e+00 : f32
    %84 = vector.broadcast %cst_37 : f32 to vector<2x8xf32>
    %85 = arith.addf %84, %83 : vector<2x8xf32>
    %86 = math.log %85 : vector<2x8xf32>
    %cst_38 = arith.constant dense<0.000000e+00> : vector<2xf32>
    %87 = vector.multi_reduction <add>, %86, %cst_38 [1] : vector<2x8xf32> to vector<2xf32>
    %88 = vector.shape_cast %87 : vector<2xf32> to vector<2x1xf32>
    %cst_39 = arith.constant -4.500000e-01 : f32
    %89 = vector.broadcast %cst_39 : f32 to vector<2x8x12xf32>
    %90 = arith.subf %18, %89 : vector<2x8x12xf32>
    %91 = arith.mulf %90, %90 : vector<2x8x12xf32>
    %cst_40 = arith.constant 0.000000e+00 : f32
    %92 = vector.broadcast %cst_40 : f32 to vector<2x8x12xf32>
    %93 = arith.subf %92, %91 : vector<2x8x12xf32>
    %cst_41 = arith.constant 5.000000e+01 : f32
    %94 = vector.broadcast %cst_41 : f32 to vector<2x8x12xf32>
    %95 = arith.mulf %93, %94 : vector<2x8x12xf32>
    %96 = math.exp %95 : vector<2x8x12xf32>
    %cst_42 = arith.constant dense<0.000000e+00> : vector<2x8xf32>
    %97 = vector.multi_reduction <add>, %96, %cst_42 [2] : vector<2x8x12xf32> to vector<2x8xf32>
    %cst_43 = arith.constant 1.000000e+00 : f32
    %98 = vector.broadcast %cst_43 : f32 to vector<2x8xf32>
    %99 = arith.addf %98, %97 : vector<2x8xf32>
    %100 = math.log %99 : vector<2x8xf32>
    %cst_44 = arith.constant dense<0.000000e+00> : vector<2xf32>
    %101 = vector.multi_reduction <add>, %100, %cst_44 [1] : vector<2x8xf32> to vector<2xf32>
    %102 = vector.shape_cast %101 : vector<2xf32> to vector<2x1xf32>
    %cst_45 = arith.constant -3.500000e-01 : f32
    %103 = vector.broadcast %cst_45 : f32 to vector<2x8x12xf32>
    %104 = arith.subf %18, %103 : vector<2x8x12xf32>
    %105 = arith.mulf %104, %104 : vector<2x8x12xf32>
    %cst_46 = arith.constant 0.000000e+00 : f32
    %106 = vector.broadcast %cst_46 : f32 to vector<2x8x12xf32>
    %107 = arith.subf %106, %105 : vector<2x8x12xf32>
    %cst_47 = arith.constant 5.000000e+01 : f32
    %108 = vector.broadcast %cst_47 : f32 to vector<2x8x12xf32>
    %109 = arith.mulf %107, %108 : vector<2x8x12xf32>
    %110 = math.exp %109 : vector<2x8x12xf32>
    %cst_48 = arith.constant dense<0.000000e+00> : vector<2x8xf32>
    %111 = vector.multi_reduction <add>, %110, %cst_48 [2] : vector<2x8x12xf32> to vector<2x8xf32>
    %cst_49 = arith.constant 1.000000e+00 : f32
    %112 = vector.broadcast %cst_49 : f32 to vector<2x8xf32>
    %113 = arith.addf %112, %111 : vector<2x8xf32>
    %114 = math.log %113 : vector<2x8xf32>
    %cst_50 = arith.constant dense<0.000000e+00> : vector<2xf32>
    %115 = vector.multi_reduction <add>, %114, %cst_50 [1] : vector<2x8xf32> to vector<2xf32>
    %116 = vector.shape_cast %115 : vector<2xf32> to vector<2x1xf32>
    %cst_51 = arith.constant -2.500000e-01 : f32
    %117 = vector.broadcast %cst_51 : f32 to vector<2x8x12xf32>
    %118 = arith.subf %18, %117 : vector<2x8x12xf32>
    %119 = arith.mulf %118, %118 : vector<2x8x12xf32>
    %cst_52 = arith.constant 0.000000e+00 : f32
    %120 = vector.broadcast %cst_52 : f32 to vector<2x8x12xf32>
    %121 = arith.subf %120, %119 : vector<2x8x12xf32>
    %cst_53 = arith.constant 5.000000e+01 : f32
    %122 = vector.broadcast %cst_53 : f32 to vector<2x8x12xf32>
    %123 = arith.mulf %121, %122 : vector<2x8x12xf32>
    %124 = math.exp %123 : vector<2x8x12xf32>
    %cst_54 = arith.constant dense<0.000000e+00> : vector<2x8xf32>
    %125 = vector.multi_reduction <add>, %124, %cst_54 [2] : vector<2x8x12xf32> to vector<2x8xf32>
    %cst_55 = arith.constant 1.000000e+00 : f32
    %126 = vector.broadcast %cst_55 : f32 to vector<2x8xf32>
    %127 = arith.addf %126, %125 : vector<2x8xf32>
    %128 = math.log %127 : vector<2x8xf32>
    %cst_56 = arith.constant dense<0.000000e+00> : vector<2xf32>
    %129 = vector.multi_reduction <add>, %128, %cst_56 [1] : vector<2x8xf32> to vector<2xf32>
    %130 = vector.shape_cast %129 : vector<2xf32> to vector<2x1xf32>
    %cst_57 = arith.constant -1.500000e-01 : f32
    %131 = vector.broadcast %cst_57 : f32 to vector<2x8x12xf32>
    %132 = arith.subf %18, %131 : vector<2x8x12xf32>
    %133 = arith.mulf %132, %132 : vector<2x8x12xf32>
    %cst_58 = arith.constant 0.000000e+00 : f32
    %134 = vector.broadcast %cst_58 : f32 to vector<2x8x12xf32>
    %135 = arith.subf %134, %133 : vector<2x8x12xf32>
    %cst_59 = arith.constant 5.000000e+01 : f32
    %136 = vector.broadcast %cst_59 : f32 to vector<2x8x12xf32>
    %137 = arith.mulf %135, %136 : vector<2x8x12xf32>
    %138 = math.exp %137 : vector<2x8x12xf32>
    %cst_60 = arith.constant dense<0.000000e+00> : vector<2x8xf32>
    %139 = vector.multi_reduction <add>, %138, %cst_60 [2] : vector<2x8x12xf32> to vector<2x8xf32>
    %cst_61 = arith.constant 1.000000e+00 : f32
    %140 = vector.broadcast %cst_61 : f32 to vector<2x8xf32>
    %141 = arith.addf %140, %139 : vector<2x8xf32>
    %142 = math.log %141 : vector<2x8xf32>
    %cst_62 = arith.constant dense<0.000000e+00> : vector<2xf32>
    %143 = vector.multi_reduction <add>, %142, %cst_62 [1] : vector<2x8xf32> to vector<2xf32>
    %144 = vector.shape_cast %143 : vector<2xf32> to vector<2x1xf32>
    %cst_63 = arith.constant -5.000000e-02 : f32
    %145 = vector.broadcast %cst_63 : f32 to vector<2x8x12xf32>
    %146 = arith.subf %18, %145 : vector<2x8x12xf32>
    %147 = arith.mulf %146, %146 : vector<2x8x12xf32>
    %cst_64 = arith.constant 0.000000e+00 : f32
    %148 = vector.broadcast %cst_64 : f32 to vector<2x8x12xf32>
    %149 = arith.subf %148, %147 : vector<2x8x12xf32>
    %cst_65 = arith.constant 5.000000e+01 : f32
    %150 = vector.broadcast %cst_65 : f32 to vector<2x8x12xf32>
    %151 = arith.mulf %149, %150 : vector<2x8x12xf32>
    %152 = math.exp %151 : vector<2x8x12xf32>
    %cst_66 = arith.constant dense<0.000000e+00> : vector<2x8xf32>
    %153 = vector.multi_reduction <add>, %152, %cst_66 [2] : vector<2x8x12xf32> to vector<2x8xf32>
    %cst_67 = arith.constant 1.000000e+00 : f32
    %154 = vector.broadcast %cst_67 : f32 to vector<2x8xf32>
    %155 = arith.addf %154, %153 : vector<2x8xf32>
    %156 = math.log %155 : vector<2x8xf32>
    %cst_68 = arith.constant dense<0.000000e+00> : vector<2xf32>
    %157 = vector.multi_reduction <add>, %156, %cst_68 [1] : vector<2x8xf32> to vector<2xf32>
    %158 = vector.shape_cast %157 : vector<2xf32> to vector<2x1xf32>
    %cst_69 = arith.constant 5.000000e-02 : f32
    %159 = vector.broadcast %cst_69 : f32 to vector<2x8x12xf32>
    %160 = arith.subf %18, %159 : vector<2x8x12xf32>
    %161 = arith.mulf %160, %160 : vector<2x8x12xf32>
    %cst_70 = arith.constant 0.000000e+00 : f32
    %162 = vector.broadcast %cst_70 : f32 to vector<2x8x12xf32>
    %163 = arith.subf %162, %161 : vector<2x8x12xf32>
    %cst_71 = arith.constant 5.000000e+01 : f32
    %164 = vector.broadcast %cst_71 : f32 to vector<2x8x12xf32>
    %165 = arith.mulf %163, %164 : vector<2x8x12xf32>
    %166 = math.exp %165 : vector<2x8x12xf32>
    %cst_72 = arith.constant dense<0.000000e+00> : vector<2x8xf32>
    %167 = vector.multi_reduction <add>, %166, %cst_72 [2] : vector<2x8x12xf32> to vector<2x8xf32>
    %cst_73 = arith.constant 1.000000e+00 : f32
    %168 = vector.broadcast %cst_73 : f32 to vector<2x8xf32>
    %169 = arith.addf %168, %167 : vector<2x8xf32>
    %170 = math.log %169 : vector<2x8xf32>
    %cst_74 = arith.constant dense<0.000000e+00> : vector<2xf32>
    %171 = vector.multi_reduction <add>, %170, %cst_74 [1] : vector<2x8xf32> to vector<2xf32>
    %172 = vector.shape_cast %171 : vector<2xf32> to vector<2x1xf32>
    %cst_75 = arith.constant 1.500000e-01 : f32
    %173 = vector.broadcast %cst_75 : f32 to vector<2x8x12xf32>
    %174 = arith.subf %18, %173 : vector<2x8x12xf32>
    %175 = arith.mulf %174, %174 : vector<2x8x12xf32>
    %cst_76 = arith.constant 0.000000e+00 : f32
    %176 = vector.broadcast %cst_76 : f32 to vector<2x8x12xf32>
    %177 = arith.subf %176, %175 : vector<2x8x12xf32>
    %cst_77 = arith.constant 5.000000e+01 : f32
    %178 = vector.broadcast %cst_77 : f32 to vector<2x8x12xf32>
    %179 = arith.mulf %177, %178 : vector<2x8x12xf32>
    %180 = math.exp %179 : vector<2x8x12xf32>
    %cst_78 = arith.constant dense<0.000000e+00> : vector<2x8xf32>
    %181 = vector.multi_reduction <add>, %180, %cst_78 [2] : vector<2x8x12xf32> to vector<2x8xf32>
    %cst_79 = arith.constant 1.000000e+00 : f32
    %182 = vector.broadcast %cst_79 : f32 to vector<2x8xf32>
    %183 = arith.addf %182, %181 : vector<2x8xf32>
    %184 = math.log %183 : vector<2x8xf32>
    %cst_80 = arith.constant dense<0.000000e+00> : vector<2xf32>
    %185 = vector.multi_reduction <add>, %184, %cst_80 [1] : vector<2x8xf32> to vector<2xf32>
    %186 = vector.shape_cast %185 : vector<2xf32> to vector<2x1xf32>
    %cst_81 = arith.constant 2.500000e-01 : f32
    %187 = vector.broadcast %cst_81 : f32 to vector<2x8x12xf32>
    %188 = arith.subf %18, %187 : vector<2x8x12xf32>
    %189 = arith.mulf %188, %188 : vector<2x8x12xf32>
    %cst_82 = arith.constant 0.000000e+00 : f32
    %190 = vector.broadcast %cst_82 : f32 to vector<2x8x12xf32>
    %191 = arith.subf %190, %189 : vector<2x8x12xf32>
    %cst_83 = arith.constant 5.000000e+01 : f32
    %192 = vector.broadcast %cst_83 : f32 to vector<2x8x12xf32>
    %193 = arith.mulf %191, %192 : vector<2x8x12xf32>
    %194 = math.exp %193 : vector<2x8x12xf32>
    %cst_84 = arith.constant dense<0.000000e+00> : vector<2x8xf32>
    %195 = vector.multi_reduction <add>, %194, %cst_84 [2] : vector<2x8x12xf32> to vector<2x8xf32>
    %cst_85 = arith.constant 1.000000e+00 : f32
    %196 = vector.broadcast %cst_85 : f32 to vector<2x8xf32>
    %197 = arith.addf %196, %195 : vector<2x8xf32>
    %198 = math.log %197 : vector<2x8xf32>
    %cst_86 = arith.constant dense<0.000000e+00> : vector<2xf32>
    %199 = vector.multi_reduction <add>, %198, %cst_86 [1] : vector<2x8xf32> to vector<2xf32>
    %200 = vector.shape_cast %199 : vector<2xf32> to vector<2x1xf32>
    %cst_87 = arith.constant 3.500000e-01 : f32
    %201 = vector.broadcast %cst_87 : f32 to vector<2x8x12xf32>
    %202 = arith.subf %18, %201 : vector<2x8x12xf32>
    %203 = arith.mulf %202, %202 : vector<2x8x12xf32>
    %cst_88 = arith.constant 0.000000e+00 : f32
    %204 = vector.broadcast %cst_88 : f32 to vector<2x8x12xf32>
    %205 = arith.subf %204, %203 : vector<2x8x12xf32>
    %cst_89 = arith.constant 5.000000e+01 : f32
    %206 = vector.broadcast %cst_89 : f32 to vector<2x8x12xf32>
    %207 = arith.mulf %205, %206 : vector<2x8x12xf32>
    %208 = math.exp %207 : vector<2x8x12xf32>
    %cst_90 = arith.constant dense<0.000000e+00> : vector<2x8xf32>
    %209 = vector.multi_reduction <add>, %208, %cst_90 [2] : vector<2x8x12xf32> to vector<2x8xf32>
    %cst_91 = arith.constant 1.000000e+00 : f32
    %210 = vector.broadcast %cst_91 : f32 to vector<2x8xf32>
    %211 = arith.addf %210, %209 : vector<2x8xf32>
    %212 = math.log %211 : vector<2x8xf32>
    %cst_92 = arith.constant dense<0.000000e+00> : vector<2xf32>
    %213 = vector.multi_reduction <add>, %212, %cst_92 [1] : vector<2x8xf32> to vector<2xf32>
    %214 = vector.shape_cast %213 : vector<2xf32> to vector<2x1xf32>
    %cst_93 = arith.constant 4.500000e-01 : f32
    %215 = vector.broadcast %cst_93 : f32 to vector<2x8x12xf32>
    %216 = arith.subf %18, %215 : vector<2x8x12xf32>
    %217 = arith.mulf %216, %216 : vector<2x8x12xf32>
    %cst_94 = arith.constant 0.000000e+00 : f32
    %218 = vector.broadcast %cst_94 : f32 to vector<2x8x12xf32>
    %219 = arith.subf %218, %217 : vector<2x8x12xf32>
    %cst_95 = arith.constant 5.000000e+01 : f32
    %220 = vector.broadcast %cst_95 : f32 to vector<2x8x12xf32>
    %221 = arith.mulf %219, %220 : vector<2x8x12xf32>
    %222 = math.exp %221 : vector<2x8x12xf32>
    %cst_96 = arith.constant dense<0.000000e+00> : vector<2x8xf32>
    %223 = vector.multi_reduction <add>, %222, %cst_96 [2] : vector<2x8x12xf32> to vector<2x8xf32>
    %cst_97 = arith.constant 1.000000e+00 : f32
    %224 = vector.broadcast %cst_97 : f32 to vector<2x8xf32>
    %225 = arith.addf %224, %223 : vector<2x8xf32>
    %226 = math.log %225 : vector<2x8xf32>
    %cst_98 = arith.constant dense<0.000000e+00> : vector<2xf32>
    %227 = vector.multi_reduction <add>, %226, %cst_98 [1] : vector<2x8xf32> to vector<2xf32>
    %228 = vector.shape_cast %227 : vector<2xf32> to vector<2x1xf32>
    %cst_99 = arith.constant 5.500000e-01 : f32
    %229 = vector.broadcast %cst_99 : f32 to vector<2x8x12xf32>
    %230 = arith.subf %18, %229 : vector<2x8x12xf32>
    %231 = arith.mulf %230, %230 : vector<2x8x12xf32>
    %cst_100 = arith.constant 0.000000e+00 : f32
    %232 = vector.broadcast %cst_100 : f32 to vector<2x8x12xf32>
    %233 = arith.subf %232, %231 : vector<2x8x12xf32>
    %cst_101 = arith.constant 5.000000e+01 : f32
    %234 = vector.broadcast %cst_101 : f32 to vector<2x8x12xf32>
    %235 = arith.mulf %233, %234 : vector<2x8x12xf32>
    %236 = math.exp %235 : vector<2x8x12xf32>
    %cst_102 = arith.constant dense<0.000000e+00> : vector<2x8xf32>
    %237 = vector.multi_reduction <add>, %236, %cst_102 [2] : vector<2x8x12xf32> to vector<2x8xf32>
    %cst_103 = arith.constant 1.000000e+00 : f32
    %238 = vector.broadcast %cst_103 : f32 to vector<2x8xf32>
    %239 = arith.addf %238, %237 : vector<2x8xf32>
    %240 = math.log %239 : vector<2x8xf32>
    %cst_104 = arith.constant dense<0.000000e+00> : vector<2xf32>
    %241 = vector.multi_reduction <add>, %240, %cst_104 [1] : vector<2x8xf32> to vector<2xf32>
    %242 = vector.shape_cast %241 : vector<2xf32> to vector<2x1xf32>
    %cst_105 = arith.constant 6.500000e-01 : f32
    %243 = vector.broadcast %cst_105 : f32 to vector<2x8x12xf32>
    %244 = arith.subf %18, %243 : vector<2x8x12xf32>
    %245 = arith.mulf %244, %244 : vector<2x8x12xf32>
    %cst_106 = arith.constant 0.000000e+00 : f32
    %246 = vector.broadcast %cst_106 : f32 to vector<2x8x12xf32>
    %247 = arith.subf %246, %245 : vector<2x8x12xf32>
    %cst_107 = arith.constant 5.000000e+01 : f32
    %248 = vector.broadcast %cst_107 : f32 to vector<2x8x12xf32>
    %249 = arith.mulf %247, %248 : vector<2x8x12xf32>
    %250 = math.exp %249 : vector<2x8x12xf32>
    %cst_108 = arith.constant dense<0.000000e+00> : vector<2x8xf32>
    %251 = vector.multi_reduction <add>, %250, %cst_108 [2] : vector<2x8x12xf32> to vector<2x8xf32>
    %cst_109 = arith.constant 1.000000e+00 : f32
    %252 = vector.broadcast %cst_109 : f32 to vector<2x8xf32>
    %253 = arith.addf %252, %251 : vector<2x8xf32>
    %254 = math.log %253 : vector<2x8xf32>
    %cst_110 = arith.constant dense<0.000000e+00> : vector<2xf32>
    %255 = vector.multi_reduction <add>, %254, %cst_110 [1] : vector<2x8xf32> to vector<2xf32>
    %256 = vector.shape_cast %255 : vector<2xf32> to vector<2x1xf32>
    %cst_111 = arith.constant 7.500000e-01 : f32
    %257 = vector.broadcast %cst_111 : f32 to vector<2x8x12xf32>
    %258 = arith.subf %18, %257 : vector<2x8x12xf32>
    %259 = arith.mulf %258, %258 : vector<2x8x12xf32>
    %cst_112 = arith.constant 0.000000e+00 : f32
    %260 = vector.broadcast %cst_112 : f32 to vector<2x8x12xf32>
    %261 = arith.subf %260, %259 : vector<2x8x12xf32>
    %cst_113 = arith.constant 5.000000e+01 : f32
    %262 = vector.broadcast %cst_113 : f32 to vector<2x8x12xf32>
    %263 = arith.mulf %261, %262 : vector<2x8x12xf32>
    %264 = math.exp %263 : vector<2x8x12xf32>
    %cst_114 = arith.constant dense<0.000000e+00> : vector<2x8xf32>
    %265 = vector.multi_reduction <add>, %264, %cst_114 [2] : vector<2x8x12xf32> to vector<2x8xf32>
    %cst_115 = arith.constant 1.000000e+00 : f32
    %266 = vector.broadcast %cst_115 : f32 to vector<2x8xf32>
    %267 = arith.addf %266, %265 : vector<2x8xf32>
    %268 = math.log %267 : vector<2x8xf32>
    %cst_116 = arith.constant dense<0.000000e+00> : vector<2xf32>
    %269 = vector.multi_reduction <add>, %268, %cst_116 [1] : vector<2x8xf32> to vector<2xf32>
    %270 = vector.shape_cast %269 : vector<2xf32> to vector<2x1xf32>
    %cst_117 = arith.constant 8.500000e-01 : f32
    %271 = vector.broadcast %cst_117 : f32 to vector<2x8x12xf32>
    %272 = arith.subf %18, %271 : vector<2x8x12xf32>
    %273 = arith.mulf %272, %272 : vector<2x8x12xf32>
    %cst_118 = arith.constant 0.000000e+00 : f32
    %274 = vector.broadcast %cst_118 : f32 to vector<2x8x12xf32>
    %275 = arith.subf %274, %273 : vector<2x8x12xf32>
    %cst_119 = arith.constant 5.000000e+01 : f32
    %276 = vector.broadcast %cst_119 : f32 to vector<2x8x12xf32>
    %277 = arith.mulf %275, %276 : vector<2x8x12xf32>
    %278 = math.exp %277 : vector<2x8x12xf32>
    %cst_120 = arith.constant dense<0.000000e+00> : vector<2x8xf32>
    %279 = vector.multi_reduction <add>, %278, %cst_120 [2] : vector<2x8x12xf32> to vector<2x8xf32>
    %cst_121 = arith.constant 1.000000e+00 : f32
    %280 = vector.broadcast %cst_121 : f32 to vector<2x8xf32>
    %281 = arith.addf %280, %279 : vector<2x8xf32>
    %282 = math.log %281 : vector<2x8xf32>
    %cst_122 = arith.constant dense<0.000000e+00> : vector<2xf32>
    %283 = vector.multi_reduction <add>, %282, %cst_122 [1] : vector<2x8xf32> to vector<2xf32>
    %284 = vector.shape_cast %283 : vector<2xf32> to vector<2x1xf32>
    %cst_123 = arith.constant 0.949999988 : f32
    %285 = vector.broadcast %cst_123 : f32 to vector<2x8x12xf32>
    %286 = arith.subf %18, %285 : vector<2x8x12xf32>
    %287 = arith.mulf %286, %286 : vector<2x8x12xf32>
    %cst_124 = arith.constant 0.000000e+00 : f32
    %288 = vector.broadcast %cst_124 : f32 to vector<2x8x12xf32>
    %289 = arith.subf %288, %287 : vector<2x8x12xf32>
    %cst_125 = arith.constant 5.000000e+01 : f32
    %290 = vector.broadcast %cst_125 : f32 to vector<2x8x12xf32>
    %291 = arith.mulf %289, %290 : vector<2x8x12xf32>
    %292 = math.exp %291 : vector<2x8x12xf32>
    %cst_126 = arith.constant dense<0.000000e+00> : vector<2x8xf32>
    %293 = vector.multi_reduction <add>, %292, %cst_126 [2] : vector<2x8x12xf32> to vector<2x8xf32>
    %cst_127 = arith.constant 1.000000e+00 : f32
    %294 = vector.broadcast %cst_127 : f32 to vector<2x8xf32>
    %295 = arith.addf %294, %293 : vector<2x8xf32>
    %296 = math.log %295 : vector<2x8xf32>
    %cst_128 = arith.constant dense<0.000000e+00> : vector<2xf32>
    %297 = vector.multi_reduction <add>, %296, %cst_128 [1] : vector<2x8xf32> to vector<2xf32>
    %298 = vector.shape_cast %297 : vector<2xf32> to vector<2x1xf32>
    %cst_129 = arith.constant 1.000000e+00 : f32
    %299 = vector.broadcast %cst_129 : f32 to vector<2x8x12xf32>
    %300 = arith.subf %18, %299 : vector<2x8x12xf32>
    %301 = arith.mulf %300, %300 : vector<2x8x12xf32>
    %cst_130 = arith.constant 0.000000e+00 : f32
    %302 = vector.broadcast %cst_130 : f32 to vector<2x8x12xf32>
    %303 = arith.subf %302, %301 : vector<2x8x12xf32>
    %cst_131 = arith.constant 5.000000e+05 : f32
    %304 = vector.broadcast %cst_131 : f32 to vector<2x8x12xf32>
    %305 = arith.mulf %303, %304 : vector<2x8x12xf32>
    %306 = math.exp %305 : vector<2x8x12xf32>
    %cst_132 = arith.constant dense<0.000000e+00> : vector<2x8xf32>
    %307 = vector.multi_reduction <add>, %306, %cst_132 [2] : vector<2x8x12xf32> to vector<2x8xf32>
    %cst_133 = arith.constant 1.000000e+00 : f32
    %308 = vector.broadcast %cst_133 : f32 to vector<2x8xf32>
    %309 = arith.addf %308, %307 : vector<2x8xf32>
    %310 = math.log %309 : vector<2x8xf32>
    %cst_134 = arith.constant dense<0.000000e+00> : vector<2xf32>
    %311 = vector.multi_reduction <add>, %310, %cst_134 [1] : vector<2x8xf32> to vector<2xf32>
    %312 = vector.shape_cast %311 : vector<2xf32> to vector<2x1xf32>
    %313 = tpu.concatenate %32, %46, %60, %74, %88, %102, %116, %130, %144, %158, %172, %186, %200, %214, %228, %242 in 1 : vector<2x1xf32>, vector<2x1xf32>, vector<2x1xf32>, vector<2x1xf32>, vector<2x1xf32>, vector<2x1xf32>, vector<2x1xf32>, vector<2x1xf32>, vector<2x1xf32>, vector<2x1xf32>, vector<2x1xf32>, vector<2x1xf32>, vector<2x1xf32>, vector<2x1xf32>, vector<2x1xf32>, vector<2x1xf32> -> vector<2x16xf32>
    %314 = tpu.concatenate %256, %270, %284, %298, %312 in 1 : vector<2x1xf32>, vector<2x1xf32>, vector<2x1xf32>, vector<2x1xf32>, vector<2x1xf32> -> vector<2x5xf32>
    %315 = tpu.concatenate %313, %314 in 1 : vector<2x16xf32>, vector<2x5xf32> -> vector<2x21xf32>
    %c0_135 = arith.constant 0 : index
    %c0_136 = arith.constant 0 : index
    %316 = vector.load %arg3[%c0_135, %c0_136] : memref<2x21xf32, #tpu.memory_space<vmem>>, vector<2x21xf32>
    tpu.vector_store %arg3[%c0_135, %c0_136], %315 {strides = array<i32>} : memref<2x21xf32, #tpu.memory_space<vmem>>, vector<2x21xf32>,
    return
  }
  func.func @transform_0(%arg0: i32) -> (i32, i32, i32) {
    %c0_i32 = arith.constant 0 : i32
    %c0_i32_0 = arith.constant 0 : i32
    %c0_i32_1 = arith.constant 0 : i32
    return %arg0, %c0_i32, %c0_i32_0 : i32, i32, i32
  }
  func.func @transform_1(%arg0: i32) -> (i32, i32, i32) {
    %c0_i32 = arith.constant 0 : i32
    %c0_i32_0 = arith.constant 0 : i32
    %c0_i32_1 = arith.constant 0 : i32
    return %arg0, %c0_i32, %c0_i32_0 : i32, i32, i32
  }
  func.func @transform_2(%arg0: i32) -> (i32, i32) {
    %c0_i32 = arith.constant 0 : i32
    %c0_i32_0 = arith.constant 0 : i32
    return %arg0, %c0_i32 : i32, i32
  }
}

</mosaic_0001>

<bundles_post_ra>
// kernel: tpu_custom_call.1
= control target key start
LH: loop header
LB: loop body
LE: loop exit
PB: predicated region body
PF: predicated region fallthrough
CT: control target
= control target key end

     0   :  { %vm20_vm0 = vcmask 261120   ;;  %vm54_vm1 = vcmask 257024   ;;  %s2695_s0 = inlined_call_operand.vmem [shape: f32[2,8,32], index: 0, kind: input, shape index: {}]   ;;  %s2696_s1 = inlined_call_operand.vmem [shape: f32[2,12,32], index: 1, kind: input, shape index: {}]   ;;  %s2697_s2 = inlined_call_operand.hbm [shape: f32[2,21], index: 2, kind: output, shape index: {}]  }
   0x1   :  { %v2381_v0 = vld [vmem:[%s2696_s1 + $0x10] sm:$0xff]  ;;  %v2386_v1 = vld [vmem:[%s2696_s1] sm:$0xff]  ;;  %v2391_v2 = vld [vmem:[%s2696_s1 + $0x18] sm:$0xf] }
   0x2   :  { %v49_v3 = vmul.f32 %v2381_v0, %v2381_v0  ;;  %v47_v4 = vmul.f32 %v2386_v1, %v2386_v1  ;;  %v50_v5 = vmul.f32 %v2391_v2, %v2391_v2  ;;  %v2402_v6 = vld [vmem:[%s2696_s1 + $0x8] sm:$0xf]  ;;  %v2414_v9 = vld [vmem:[%s2695_s0] sm:$0xff] }
   0x3   :  { %v48_v7 = vmul.f32 %v2402_v6, %v2402_v6  ;;  %v2409_v8 = vld [vmem:[%s2695_s0 + $0x8] sm:$0xff] }
   0x4   :  { %7 = vsyncpa [#allocation3], 0  ;;  %v58_v10 = vsel %vm20_vm0, %v49_v3, 0.0  ;;  %v51_v11 = vsel %vm20_vm0, %v47_v4, 0.0  ;;  %v61_v12 = vsel %vm54_vm1, %v50_v5, 0.0  ;;  %v19_v14 = vmul.f32 %v2409_v8, %v2409_v8  ;;  %s2361_s0 = smov 16  }
   0x5   :  { %59 = vadd.xlane.f32.xlu1 %v58_v10  ;;  %52 = vadd.xlane.f32.xlu0 %v51_v11  ;;  %v55_v13 = vsel %vm54_vm1, %v48_v7, 0.0  ;;  %v18_v15 = vmul.f32 %v2414_v9, %v2414_v9  ;;  %v2358_v18 = vmov 0.0|0.0   ;;  %vm2359_vm2 = vmmov 0   ;;  %s2362_s1 = smov [#allocation2]  }
   0x6   :  { %v24_v16 = vsel %vm20_vm0, %v19_v14, 0.0  ;;  %2081 = vmatprep.subr.bf16.mxu0 %v2358_v18  ;;  %2099 = vmatprep.subr.bf16.mxu1 %v2358_v18  ;;  %v2360_v19 = vmov 0.0   ;;  %vm1052_vm15 = vcmask 97280   ;;  %vm1080_vm1 = vcmask 58368   ;;  %s1911_s21 = sshll.u32 %s2362_s1, 4  ;;  %s1912_s21 = int_to_ptr.vmem [resolvable:$true] %s1911_s21 }
   0x7   :  { %v21_v17 = vsel %vm20_vm0, %v18_v15, 0.0  ;;  %2001 = vmatprep.mubr.msk.f32.mxu0 %vm2359_vm2, %v2360_v19  ;;  %2043 = vmatprep.mubr.msk.f32.mxu1 %vm2359_vm2, %v2360_v19  ;;  %s2334_s22 = scalar_lea.vmem %s1912_s21, 32  ;;  %p2339_p1 = scmp.lt.s32.totalorder %s1912_s21, %s1912_s21 }
   0x8   :  { %p2335_p0 = scmp.ne.s32.totalorder %s1912_s21, %s2334_s22  ;;  %p2340_p2 = scmp.lt.s32.totalorder %s2334_s22, %s2334_s22 }
   0x9   :  { %62 = vadd.xlane.f32.xlu1 %v61_v12  ;;  %56 = vadd.xlane.f32.xlu0 %v55_v13 }
   0xa   :  { %p2341_p3 = por %p2340_p2, %p2339_p1 }
   0xc   :  { %p2342_p4 = pnand %p2341_p3, %p2335_p0 }
   0xd   :  { %25 = vadd.xlane.f32.xlu1 %v24_v16  ;;  %22 = vadd.xlane.f32.xlu0 %v21_v17 }
  0x92   :  { %v60_v20 = vpop.xlane.xlu1 %59  ;;  %v53_v21 = vpop.xlane.xlu0 %52 }
  0x93   :  { %2142 = vrsqrt.f32 %v60_v20  ;;  %vm80_vm3 = vcmp.eq.f32.partialorder %v60_v20, inf  ;;  %v83_v29 = vand.u32 2147483648, %v60_v20  ;;  %vm82_vm4 = vcmp.eq.f32.partialorder %v60_v20, 0.0 }
  0x94   :  { %2144 = vrsqrt.f32 %v53_v21  ;;  %vm66_vm5 = vcmp.eq.f32.partialorder %v53_v21, inf  ;;  %v69_v32 = vand.u32 2147483648, %v53_v21  ;;  %vm68_vm6 = vcmp.eq.f32.partialorder %v53_v21, 0.0 }
  0x96   :  { %v63_v22 = vpop.xlane.xlu1 %62  ;;  %v57_v23 = vpop.xlane.xlu0 %56 }
  0x97   :  { %2146 = vrsqrt.f32 %v63_v22  ;;  %vm87_vm7 = vcmp.eq.f32.partialorder %v63_v22, inf  ;;  %vm89_vm8 = vcmp.eq.f32.partialorder %v63_v22, 0.0  ;;  %v90_v41 = vand.u32 2147483648, %v63_v22 }
  0x98   :  { %2148 = vrsqrt.f32 %v57_v23  ;;  %vm73_vm9 = vcmp.eq.f32.partialorder %v57_v23, inf  ;;  %v76_v44 = vand.u32 2147483648, %v57_v23  ;;  %vm75_vm10 = vcmp.eq.f32.partialorder %v57_v23, 0.0 }
  0x9a   :  { %v26_v24 = vpop.xlane.xlu1 %25  ;;  %v23_v25 = vpop.xlane.xlu0 %22 }
  0x9b   :  { %2150 = vrsqrt.f32 %v26_v24  ;;  %vm36_vm11 = vcmp.eq.f32.partialorder %v26_v24, inf  ;;  %vm38_vm12 = vcmp.eq.f32.partialorder %v26_v24, 0.0  ;;  %v39_v53 = vand.u32 2147483648, %v26_v24 }
  0x9c   :  { %2152 = vrsqrt.f32 %v23_v25  ;;  %vm29_vm13 = vcmp.eq.f32.partialorder %v23_v25, inf  ;;  %v32_v56 = vand.u32 2147483648, %v23_v25  ;;  %vm31_vm14 = vcmp.eq.f32.partialorder %v23_v25, 0.0 }
  0x9d   :  { %v2143_v26 = vpop.eup %2142 }
  0x9e   :  { %v2145_v27 = vpop.eup %2144  ;;  %v79_v28 = vmul.f32 %v2143_v26, %v60_v20 }
  0x9f   :  { %v65_v30 = vmul.f32 %v2145_v27, %v53_v21 }
  0xa0   :  { %v81_v31 = vsel %vm80_vm3, %v60_v20, %v79_v28  ;;  %vm1866_vm3 = vcmask 15360  }
  0xa1   :  { %v2147_v33 = vpop.eup %2146  ;;  %v84_v34 = vsel %vm82_vm4, %v83_v29, %v81_v31  ;;  %v67_v35 = vsel %vm66_vm5, %v53_v21, %v65_v30  ;;  %vm1868_vm4 = vcmask 23552   ;;  %vm1870_vm5 = vcmask 31744  }
  0xa2   :  { %v2149_v36 = vpop.eup %2148  ;;  %v94_v37 = vadd.f32 1e-13, %v84_v34  ;;  %v70_v38 = vsel %vm68_vm6, %v69_v32, %v67_v35  ;;  %v86_v39 = vmul.f32 %v2147_v33, %v63_v22  ;;  %vm1872_vm6 = vcmask 39936  }
  0xa3   :  { %v92_v40 = vadd.f32 1e-13, %v70_v38  ;;  %v72_v42 = vmul.f32 %v2149_v36, %v57_v23 }
  0xa4   :  { %2154 = vrcp.f32 %v94_v37  ;;  %v88_v43 = vsel %vm87_vm7, %v63_v22, %v86_v39  ;;  %vm1874_vm7 = vcmask 48128  }
  0xa5   :  { %v2151_v45 = vpop.eup %2150  ;;  %2156 = vrcp.f32 %v92_v40  ;;  %v91_v46 = vsel %vm89_vm8, %v90_v41, %v88_v43  ;;  %v74_v47 = vsel %vm73_vm9, %v57_v23, %v72_v42  ;;  %vm1876_vm8 = vcmask 56320  }
  0xa6   :  { %v2153_v48 = vpop.eup %2152  ;;  %v95_v49 = vadd.f32 1e-13, %v91_v46  ;;  %v77_v50 = vsel %vm75_vm10, %v76_v44, %v74_v47  ;;  %v35_v51 = vmul.f32 %v2151_v45, %v26_v24  ;;  %vm1878_vm9 = vcmask 64512  }
  0xa7   :  { %v93_v52 = vadd.f32 1e-13, %v77_v50  ;;  %v28_v54 = vmul.f32 %v2153_v48, %v23_v25  ;;  %vm1880_vm10 = vcmask 72704  }
  0xa8   :  { %2158 = vrcp.f32 %v95_v49  ;;  %v37_v55 = vsel %vm36_vm11, %v26_v24, %v35_v51  ;;  %vm1882_vm11 = vcmask 80896  }
  0xa9   :  { %2160 = vrcp.f32 %v93_v52  ;;  %v40_v57 = vsel %vm38_vm12, %v39_v53, %v37_v55  ;;  %v30_v58 = vsel %vm29_vm13, %v23_v25, %v28_v54  ;;  %vm1884_vm12 = vcmask 89088  }
  0xaa   :  { %v42_v59 = vadd.f32 1e-13, %v40_v57  ;;  %v33_v60 = vsel %vm31_vm14, %v32_v56, %v30_v58  ;;  %vm1887_vm13 = vcmask 105472   ;;  %vm1889_vm14 = vcmask 113664  }
  0xab   :  { %v41_v61 = vadd.f32 1e-13, %v33_v60 }
  0xac   :  { %2162 = vrcp.f32 %v42_v59 }
  0xad   :  { %2164 = vrcp.f32 %v41_v61 }
  0xae   :  { %v2155_v62 = vpop.eup %2154 }
  0xaf   :  { %v2157_v63 = vpop.eup %2156  ;;  %v101_v3 = vmul.f32 %v2155_v62, %v2381_v0 }
  0xb0   :  { %v97_v4 = vmul.f32 %v2157_v63, %v2386_v1 }
  0xb1   :  { %v576_v5 = vsel %vm20_vm0, %v101_v3, 0 }
  0xb2   :  { %v2159_v7 = vpop.eup %2158  ;;  %v108_v10 = vsel %vm20_vm0, %v97_v4, 0  ;;  %v582_v11 = vand.u32 4294901760, %v576_v5 }
  0xb3   :  { %v2161_v12 = vpop.eup %2160  ;;  %v114_v13 = vand.u32 4294901760, %v108_v10  ;;  %v103_v14 = vmul.f32 %v2159_v7, %v2391_v2 }
  0xb4   :  { %v99_v15 = vmul.f32 %v2161_v12, %v2402_v6  ;;  %v2437_v17 = vsub.f32 %v576_v5, %v582_v11 }
  0xb5   :  { %v579_v16 = vsel %vm20_vm0, %v103_v14, 0  ;;  %v2440_v1 = vsub.f32 %v108_v10, %v114_v13 }
  0xb6   :  { %v2163_v20 = vpop.eup %2162  ;;  %v111_v0 = vsel %vm20_vm0, %v99_v15, 0  ;;  %v585_v21 = vand.u32 4294901760, %v579_v16  ;;  %v661_v29 = vand.u32 4294901760, %v2437_v17 }
  0xb7   :  { %v2165_v22 = vpop.eup %2164  ;;  %v117_v23 = vand.u32 4294901760, %v111_v0  ;;  %v46_v24 = vmul.f32 %v2163_v20, %v2409_v8  ;;  %v193_v31 = vand.u32 4294901760, %v2440_v1 }
  0xb8   :  { %v2443_v25 = vpack.c.bf16 %v585_v21, %v582_v11  ;;  %v667_v26 = vsub.f32 %v579_v16, %v585_v21  ;;  %v44_v2 = vmul.f32 %v2165_v22, %v2414_v9  ;;  %v662_v38 = vsub.f32 %v2437_v17, %v661_v29 }
  0xb9   :  { %v2446_v6 = vpack.c.bf16 %v117_v23, %v114_v13  ;;  %v199_v27 = vsub.f32 %v111_v0, %v117_v23  ;;  %v573_v28 = vsel %vm20_vm0, %v46_v24, 0  ;;  %v194_v39 = vsub.f32 %v2440_v1, %v193_v31 }
  0xba   :  { %2101 = vmatpush3.bf16.xpose.msra.mxu1 %v2443_v25  ;;  %v105_v30 = vsel %vm20_vm0, %v44_v2, 0  ;;  %v2453_v32 = vand.u32 4294901760, %v573_v28  ;;  %v668_v8 = vand.u32 4294901760, %v667_v26  ;;  %v663_v46 = vand.u32 4294901760, %v662_v38 }
  0xbb   :  { %2083 = vmatpush3.bf16.xpose.msra.mxu0 %v2446_v6  ;;  %2102 = vmatprep.subr.bf16.mxu1 %v2358_v18  ;;  %v2457_v9 = vand.u32 4294901760, %v105_v30  ;;  %v200_v33 = vand.u32 4294901760, %v199_v27  ;;  %v195_v47 = vand.u32 4294901760, %v194_v39  ;;  %v2106_v52 = vpack.c.bf16 %v667_v26, %v2437_v17 }
  0xbc   :  { %2084 = vmatprep.subr.bf16.mxu0 %v2358_v18  ;;  %v649_v34 = vsub.f32 %v573_v28, %v2453_v32  ;;  %v669_v35 = vsub.f32 %v667_v26, %v668_v8  ;;  %v2088_v53 = vpack.c.bf16 %v199_v27, %v2440_v1  ;;  %v2112_v54 = vpack.c.bf16 %v668_v8, %v661_v29 }
  0xbd   :  { %v181_v36 = vsub.f32 %v105_v30, %v2457_v9  ;;  %v201_v37 = vsub.f32 %v199_v27, %v200_v33  ;;  %v2094_v55 = vpack.c.bf16 %v200_v33, %v193_v31  ;;  %vm1077_vm0 = vcmask 1041409  }
  0xbe   :  { %v650_v40 = vand.u32 4294901760, %v649_v34  ;;  %v670_v42 = vand.u32 4294901760, %v669_v35 }
  0xbf   :  { %v182_v41 = vand.u32 4294901760, %v181_v36  ;;  %v202_v43 = vand.u32 4294901760, %v201_v37 }
  0xc0   :  { %v651_v44 = vsub.f32 %v649_v34, %v650_v40  ;;  %v2103_v50 = vpack.c.bf16 %v670_v42, %v663_v46 }
  0xc1   :  { %v183_v45 = vsub.f32 %v181_v36, %v182_v41  ;;  %v2085_v51 = vpack.c.bf16 %v202_v43, %v195_v47 }
  0xc2   :  { %v652_v48 = vand.u32 4294901760, %v651_v44 }
  0xc3   :  { %v184_v49 = vand.u32 4294901760, %v183_v45 }
  0xc4   :  { %2044 = vmatmul.mubr.f32.vlgmr.msra.gmra.mrb[0].mxu1 %v652_v48 }
  0xc5   :  { %2002 = vmatmul.mubr.f32.vlgmr.msra.gmra.mrb[0].mxu0 %v184_v49  ;;  %2104 = vmatpush3.bf16.xpose.msra.mxu1 %v2103_v50 }
  0xc6   :  { %2086 = vmatpush3.bf16.xpose.msra.mxu0 %v2085_v51  ;;  %2008 = vmatprep.mubr.msk.f32.mxu0 %vm2359_vm2, %v2360_v19 }
  0xc7   :  { %2087 = vmatprep.subr.bf16.mxu0 %v2358_v18  ;;  %2050 = vmatprep.mubr.msk.f32.mxu1 %vm2359_vm2, %v2360_v19 }
  0xc8   :  { %2105 = vmatprep.subr.bf16.mxu1 %v2358_v18 }
  0xcc   :  { %2051 = vmatmul.mubr.f32.vlgmr.msra.gmra.mrb[0].mxu1 %v2453_v32 }
  0xcd   :  { %2009 = vmatmul.mubr.f32.vlgmr.msra.gmra.mrb[0].mxu0 %v2457_v9  ;;  %2107 = vmatpush3.bf16.xpose.msra.mxu1 %v2106_v52 }
  0xce   :  { %2089 = vmatpush3.bf16.xpose.msra.mxu0 %v2088_v53  ;;  %2015 = vmatprep.mubr.msk.f32.mxu0 %vm2359_vm2, %v2360_v19 }
  0xcf   :  { %2090 = vmatprep.subr.bf16.mxu0 %v2358_v18  ;;  %2057 = vmatprep.mubr.msk.f32.mxu1 %vm2359_vm2, %v2360_v19 }
  0xd0   :  { %2108 = vmatprep.subr.bf16.mxu1 %v2358_v18 }
  0xd4   :  { %2058 = vmatmul.mubr.f32.vlgmr.msra.gmra.mrb[0].mxu1 %v649_v34 }
  0xd5   :  { %2016 = vmatmul.mubr.f32.vlgmr.msra.gmra.mrb[0].mxu0 %v181_v36  ;;  %2110 = vmatpush3.bf16.xpose.msra.mxu1 %v2443_v25 }
  0xd6   :  { %2092 = vmatpush3.bf16.xpose.msra.mxu0 %v2446_v6  ;;  %2022 = vmatprep.mubr.msk.f32.mxu0 %vm2359_vm2, %v2360_v19 }
  0xd7   :  { %2093 = vmatprep.subr.bf16.mxu0 %v2358_v18  ;;  %2064 = vmatprep.mubr.msk.f32.mxu1 %vm2359_vm2, %v2360_v19 }
  0xd8   :  { %2111 = vmatprep.subr.bf16.mxu1 %v2358_v18 }
  0xdc   :  { %2065 = vmatmul.mubr.f32.vlgmr.msra.gmra.mrb[0].mxu1 %v650_v40 }
  0xdd   :  { %2023 = vmatmul.mubr.f32.vlgmr.msra.gmra.mrb[0].mxu0 %v182_v41  ;;  %2113 = vmatpush3.bf16.xpose.msra.mxu1 %v2112_v54 }
  0xde   :  { %2095 = vmatpush3.bf16.xpose.msra.mxu0 %v2094_v55  ;;  %2029 = vmatprep.mubr.msk.f32.mxu0 %vm2359_vm2, %v2360_v19 }
  0xdf   :  { %2096 = vmatprep.subr.bf16.mxu0 %v2358_v18  ;;  %2071 = vmatprep.mubr.msk.f32.mxu1 %vm2359_vm2, %v2360_v19 }
  0xe0   :  { %2114 = vmatprep.subr.bf16.mxu1 %v2358_v18 }
  0xe4   :  { %2072 = vmatmul.mubr.f32.vlgmr.msra.gmra.mrb[0].mxu1 %v2453_v32 }
  0xe5   :  { %2030 = vmatmul.mubr.f32.vlgmr.msra.gmra.mrb[0].mxu0 %v2457_v9  ;;  %2116 = vmatpush3.bf16.xpose.msra.mxu1 %v2443_v25 }
  0xe6   :  { %2098 = vmatpush3.bf16.xpose.msra.mxu0 %v2446_v6  ;;  %2036 = vmatprep.mubr.msk.f32.mxu0 %vm2359_vm2, %v2360_v19 }
  0xe7   :  { %2078 = vmatprep.mubr.msk.f32.mxu1 %vm2359_vm2, %v2360_v19  ;;  %vm1864_vm2 = vcmask 7168  }
  0xec   :  { %2079 = vmatmul.mubr.f32.vlgmr.msra.gmra.mrb[0].mxu1 %v2453_v32 }
  0xed   :  { %2037 = vmatmul.mubr.f32.vlgmr.msra.gmra.mrb[0].mxu0 %v2457_v9 }
 0x1bf   :  { %v2504_v56 = vpop.f32.mrb[0].mxu1 }
 0x1c0   :  { %v2506_v18 = vpop.f32.mrb[0].mxu0  ;;  %v2080_v57 = vpop.f32.mrb[1].mxu1  ;;  %v1952_v58 = vadd.f32 -0.65, %v2504_v56  ;;  %v1954_v59 = vadd.f32 -0.75, %v2504_v56  ;;  %v1960_v60 = vadd.f32 -1.0, %v2504_v56 }
 0x1c1   :  { %v2038_v61 = vpop.f32.mrb[1].mxu0  ;;  %v1951_v62 = vadd.f32 -0.65, %v2506_v18  ;;  %v1953_v19 = vadd.f32 -0.75, %v2506_v18  ;;  %v1956_v63 = vadd.f32 -0.85, %v2504_v56 }
 0x1c2   :  { %v1672_v3 = vmul.f32 %v1952_v58, %v1952_v58  ;;  %v1711_v4 = vmul.f32 %v1954_v59, %v1954_v59  ;;  %v1955_v5 = vadd.f32 -0.85, %v2506_v18  ;;  %v1958_v7 = vadd.f32 -0.95, %v2504_v56 }
 0x1c3   :  { %v1671_v10 = vmul.f32 %v1951_v62, %v1951_v62  ;;  %v1710_v11 = vmul.f32 %v1953_v19, %v1953_v19  ;;  %v1750_v12 = vmul.f32 %v1956_v63, %v1956_v63  ;;  %v1957_v13 = vadd.f32 -0.95, %v2506_v18 }
 0x1c4   :  { %v1674_v14 = vsub.f32 0.0, %v1672_v3  ;;  %v1713_v15 = vsub.f32 0.0, %v1711_v4  ;;  %v1749_v16 = vmul.f32 %v1955_v5, %v1955_v5  ;;  %v1789_v17 = vmul.f32 %v1958_v7, %v1958_v7 }
 0x1c5   :  { %v1673_v20 = vsub.f32 0.0, %v1671_v10  ;;  %v1712_v0 = vsub.f32 0.0, %v1710_v11  ;;  %v1752_v1 = vsub.f32 0.0, %v1750_v12  ;;  %v1788_v21 = vmul.f32 %v1957_v13, %v1957_v13 }
 0x1c6   :  { %v1676_v22 = vmul.f32 50.0, %v1674_v14  ;;  %v1715_v23 = vmul.f32 50.0, %v1713_v15  ;;  %v1751_v24 = vsub.f32 0.0, %v1749_v16  ;;  %v1791_v25 = vsub.f32 0.0, %v1789_v17 }
 0x1c7   :  { %v1675_v26 = vmul.f32 50.0, %v1673_v20  ;;  %v1714_v2 = vmul.f32 50.0, %v1712_v0  ;;  %v1754_v6 = vmul.f32 50.0, %v1752_v1  ;;  %v1790_v30 = vsub.f32 0.0, %v1788_v21 }
 0x1c8   :  { %v1679_v27 = vmul.f32 1.442695, %v1676_v22  ;;  %v1718_v28 = vmul.f32 1.442695, %v1715_v23  ;;  %v1753_v29 = vmul.f32 50.0, %v1751_v24  ;;  %v1793_v8 = vmul.f32 50.0, %v1791_v25 }
 0x1c9   :  { %v1677_v31 = vmul.f32 1.442695, %v1675_v26  ;;  %v1716_v32 = vmul.f32 1.442695, %v1714_v2  ;;  %v1828_v9 = vmul.f32 %v1960_v60, %v1960_v60  ;;  %v1757_v33 = vmul.f32 1.442695, %v1754_v6 }
 0x1ca   :  { %2166 = vpow2.f32 %v1679_v27  ;;  %v1755_v34 = vmul.f32 1.442695, %v1753_v29  ;;  %v1959_v36 = vadd.f32 -1.0, %v2506_v18  ;;  %v1920_v37 = vadd.f32 0.95, %v2504_v56 }
 0x1cb   :  { %2168 = vpow2.f32 %v1677_v31  ;;  %v1830_v35 = vsub.f32 0.0, %v1828_v9  ;;  %v1792_v38 = vmul.f32 50.0, %v1790_v30  ;;  %v1919_v39 = vadd.f32 0.95, %v2506_v18 }
 0x1cc   :  { %2170 = vpow2.f32 %v1718_v28  ;;  %v1922_v40 = vadd.f32 0.85, %v2504_v56  ;;  %v1796_v41 = vmul.f32 1.442695, %v1793_v8  ;;  %v1827_v42 = vmul.f32 %v1959_v36, %v1959_v36 }
 0x1cd   :  { %2172 = vpow2.f32 %v1716_v32  ;;  %v1043_v43 = vmul.f32 %v1920_v37, %v1920_v37  ;;  %v1832_v44 = vmul.f32 500000.0, %v1830_v35  ;;  %v1042_v45 = vmul.f32 %v1919_v39, %v1919_v39 }
 0x1ce   :  { %v1087_v46 = vmul.f32 %v1922_v40, %v1922_v40  ;;  %v1921_v47 = vadd.f32 0.85, %v2506_v18  ;;  %2174 = vpow2.f32 %v1757_v33  ;;  %v1829_v48 = vsub.f32 0.0, %v1827_v42 }
 0x1cf   :  { %v1045_v49 = vsub.f32 0.0, %v1043_v43  ;;  %v1794_v50 = vmul.f32 1.442695, %v1792_v38  ;;  %v1044_v51 = vsub.f32 0.0, %v1042_v45  ;;  %2176 = vpow2.f32 %v1755_v34 }
 0x1d0   :  { %v1089_v52 = vsub.f32 0.0, %v1087_v46  ;;  %v1086_v53 = vmul.f32 %v1921_v47, %v1921_v47  ;;  %v1831_v54 = vmul.f32 500000.0, %v1829_v48  ;;  %v1924_v57 = vadd.f32 0.75, %v2504_v56 }
 0x1d1   :  { %v1047_v55 = vmul.f32 50.0, %v1045_v49  ;;  %2178 = vpow2.f32 %v1796_v41  ;;  %v1835_v58 = vmul.f32 1.442695, %v1832_v44  ;;  %v1046_v59 = vmul.f32 50.0, %v1044_v51 }
 0x1d2   :  { %v1088_v60 = vsub.f32 0.0, %v1086_v53  ;;  %v1126_v61 = vmul.f32 %v1924_v57, %v1924_v57  ;;  %v1923_v62 = vadd.f32 0.75, %v2506_v18  ;;  %2180 = vpow2.f32 %v1794_v50 }
 0x1d3   :  { %v1833_v63 = vmul.f32 1.442695, %v1831_v54  ;;  %v1091_v3 = vmul.f32 50.0, %v1089_v52  ;;  %v1050_v7 = vmul.f32 1.442695, %v1047_v55  ;;  %2182 = vpow2.f32 %v1835_v58 }
 0x1d4   :  { %v2167_v19 = vpop.eup %2166  ;;  %v1128_v10 = vsub.f32 0.0, %v1126_v61  ;;  %v1125_v11 = vmul.f32 %v1923_v62, %v1923_v62  ;;  %v1926_v14 = vadd.f32 0.65, %v2504_v56  ;;  %v1048_v16 = vmul.f32 1.442695, %v1046_v59 }
 0x1d5   :  { %v2169_v4 = vpop.eup %2168  ;;  %v1684_v5 = vsel %vm1052_vm15, %v2167_v19, 0.0  ;;  %v1090_v17 = vmul.f32 50.0, %v1088_v60  ;;  %2184 = vpow2.f32 %v1833_v63  ;;  %v1094_v0 = vmul.f32 1.442695, %v1091_v3 }
 0x1d6   :  { %v2171_v12 = vpop.eup %2170  ;;  %1685 = vadd.xlane.f32.xlu1 %v1684_v5  ;;  %v1681_v13 = vsel %vm1052_vm15, %v2169_v4, 0.0  ;;  %v1127_v20 = vsub.f32 0.0, %v1125_v11  ;;  %v1165_v1 = vmul.f32 %v1926_v14, %v1926_v14  ;;  %v1925_v21 = vadd.f32 0.65, %v2506_v18 }
 0x1d7   :  { %v2173_v15 = vpop.eup %2172  ;;  %1682 = vadd.xlane.f32.xlu0 %v1681_v13  ;;  %v1723_v23 = vsel %vm1052_vm15, %v2171_v12, 0.0  ;;  %2186 = vpow2.f32 %v1050_v7  ;;  %v1130_v24 = vmul.f32 50.0, %v1128_v10  ;;  %v1928_v6 = vadd.f32 0.55, %v2504_v56 }
 0x1d8   :  { %v2175_v22 = vpop.eup %2174  ;;  %v1720_v25 = vsel %vm1052_vm15, %v2173_v15, 0.0  ;;  %v1167_v26 = vsub.f32 0.0, %v1165_v1  ;;  %v1164_v2 = vmul.f32 %v1925_v21, %v1925_v21  ;;  %2188 = vpow2.f32 %v1048_v16 }
 0x1d9   :  { %v2177_v27 = vpop.eup %2176  ;;  %v1092_v28 = vmul.f32 1.442695, %v1090_v17  ;;  %v1129_v29 = vmul.f32 50.0, %v1127_v20  ;;  %v1927_v30 = vadd.f32 0.55, %v2506_v18  ;;  %v1762_v32 = vsel %vm1052_vm15, %v2175_v22, 0.0 }
 0x1da   :  { %1724 = vadd.xlane.f32.xlu1 %v1723_v23  ;;  %2190 = vpow2.f32 %v1094_v0  ;;  %v1166_v8 = vsub.f32 0.0, %v1164_v2  ;;  %v1204_v9 = vmul.f32 %v1928_v6, %v1928_v6  ;;  %v1133_v33 = vmul.f32 1.442695, %v1130_v24 }
 0x1db   :  { %1721 = vadd.xlane.f32.xlu0 %v1720_v25  ;;  %v2179_v31 = vpop.eup %2178  ;;  %v1169_v34 = vmul.f32 50.0, %v1167_v26  ;;  %v1203_v35 = vmul.f32 %v1927_v30, %v1927_v30  ;;  %v1930_v36 = vadd.f32 0.45, %v2504_v56  ;;  %v1759_v38 = vsel %vm1052_vm15, %v2177_v27, 0.0 }
 0x1dc   :  { %v2181_v37 = vpop.eup %2180  ;;  %v1168_v39 = vmul.f32 50.0, %v1166_v8  ;;  %v1206_v40 = vsub.f32 0.0, %v1204_v9  ;;  %v1929_v41 = vadd.f32 0.45, %v2506_v18  ;;  %v1131_v42 = vmul.f32 1.442695, %v1129_v29 }
 0x1dd   :  { %v1205_v43 = vsub.f32 0.0, %v1203_v35  ;;  %v1243_v44 = vmul.f32 %v1930_v36, %v1930_v36  ;;  %v1932_v45 = vadd.f32 0.35, %v2504_v56  ;;  %v1931_v46 = vadd.f32 0.35, %v2506_v18  ;;  %v2183_v48 = vpop.eup %2182 }
 0x1de   :  { %1763 = vadd.xlane.f32.xlu1 %v1762_v32  ;;  %v1934_v47 = vadd.f32 0.25, %v2504_v56  ;;  %v1801_v49 = vsel %vm1052_vm15, %v2179_v31, 0.0  ;;  %2192 = vpow2.f32 %v1092_v28  ;;  %v1172_v50 = vmul.f32 1.442695, %v1169_v34 }
 0x1df   :  { %1760 = vadd.xlane.f32.xlu0 %v1759_v38  ;;  %v1242_v51 = vmul.f32 %v1929_v41, %v1929_v41  ;;  %v2185_v52 = vpop.eup %2184  ;;  %v1798_v53 = vsel %vm1052_vm15, %v2181_v37, 0.0  ;;  %2194 = vpow2.f32 %v1133_v33  ;;  %v1170_v54 = vmul.f32 1.442695, %v1168_v39 }
 0x1e0   :  { %v1208_v55 = vmul.f32 50.0, %v1206_v40  ;;  %2196 = vpow2.f32 %v1131_v42  ;;  %v1207_v58 = vmul.f32 50.0, %v1205_v43  ;;  %v1245_v59 = vsub.f32 0.0, %v1243_v44 }
 0x1e1   :  { %v2187_v57 = vpop.eup %2186  ;;  %v1282_v60 = vmul.f32 %v1932_v45, %v1932_v45  ;;  %v1244_v61 = vsub.f32 0.0, %v1242_v51  ;;  %v1281_v62 = vmul.f32 %v1931_v46, %v1931_v46  ;;  %v1840_v63 = vsel %vm1052_vm15, %v2183_v48, 0.0 }
 0x1e2   :  { %1802 = vadd.xlane.f32.xlu1 %v1801_v49  ;;  %v2189_v19 = vpop.eup %2188  ;;  %2198 = vpow2.f32 %v1172_v50  ;;  %v1321_v3 = vmul.f32 %v1934_v47, %v1934_v47  ;;  %v1837_v5 = vsel %vm1052_vm15, %v2185_v52, 0.0  ;;  %v1211_v7 = vmul.f32 1.442695, %v1208_v55 }
 0x1e3   :  { %1799 = vadd.xlane.f32.xlu0 %v1798_v53  ;;  %2200 = vpow2.f32 %v1170_v54  ;;  %v1933_v10 = vadd.f32 0.25, %v2506_v18  ;;  %v1209_v11 = vmul.f32 1.442695, %v1207_v58  ;;  %v1247_v12 = vmul.f32 50.0, %v1245_v59 }
 0x1e4   :  { %v2191_v4 = vpop.eup %2190  ;;  %v1284_v13 = vsub.f32 0.0, %v1282_v60  ;;  %v1936_v14 = vadd.f32 0.15, %v2504_v56  ;;  %v1246_v15 = vmul.f32 50.0, %v1244_v61  ;;  %v1283_v16 = vsub.f32 0.0, %v1281_v62 }
 0x1e5   :  { %v1056_v17 = vsel %vm1052_vm15, %v2187_v57, 0.0  ;;  %v1323_v20 = vsub.f32 0.0, %v1321_v3  ;;  %v1320_v0 = vmul.f32 %v1933_v10, %v1933_v10  ;;  %v1935_v1 = vadd.f32 0.15, %v2506_v18 }
 0x1e6   :  { %1841 = vadd.xlane.f32.xlu1 %v1840_v63  ;;  %v1053_v21 = vsel %vm1052_vm15, %v2189_v19, 0.0  ;;  %2202 = vpow2.f32 %v1211_v7  ;;  %v1360_v22 = vmul.f32 %v1936_v14, %v1936_v14  ;;  %v1938_v23 = vadd.f32 0.05, %v2504_v56 }
 0x1e7   :  { %1838 = vadd.xlane.f32.xlu0 %v1837_v5  ;;  %2204 = vpow2.f32 %v1209_v11  ;;  %v1250_v25 = vmul.f32 1.442695, %v1247_v12  ;;  %v1286_v26 = vmul.f32 50.0, %v1284_v13  ;;  %v1099_v6 = vsel %vm1052_vm15, %v2191_v4, 0.0 }
 0x1e8   :  { %v2193_v24 = vpop.eup %2192  ;;  %v1248_v27 = vmul.f32 1.442695, %v1246_v15  ;;  %v1285_v28 = vmul.f32 50.0, %v1283_v16  ;;  %v1325_v30 = vmul.f32 50.0, %v1323_v20  ;;  %v1322_v31 = vsub.f32 0.0, %v1320_v0 }
 0x1e9   :  { %v2195_v2 = vpop.eup %2194  ;;  %v1359_v32 = vmul.f32 %v1935_v1, %v1935_v1  ;;  %v1937_v8 = vadd.f32 0.05, %v2506_v18  ;;  %v1096_v9 = vsel %vm1052_vm15, %v2193_v24, 0.0  ;;  %v1362_v33 = vsub.f32 0.0, %v1360_v22 }
 0x1ea   :  { %1057 = vadd.xlane.f32.xlu1 %v1056_v17  ;;  %v2197_v29 = vpop.eup %2196  ;;  %v1399_v34 = vmul.f32 %v1938_v23, %v1938_v23  ;;  %v1940_v35 = vadd.f32 -0.05, %v2504_v56  ;;  %2206 = vpow2.f32 %v1250_v25  ;;  %v1289_v37 = vmul.f32 1.442695, %v1286_v26 }
 0x1eb   :  { %1054 = vadd.xlane.f32.xlu0 %v1053_v21  ;;  %v1939_v38 = vadd.f32 -0.05, %v2506_v18  ;;  %v1138_v40 = vsel %vm1052_vm15, %v2195_v2, 0.0  ;;  %v1135_v41 = vsel %vm1052_vm15, %v2197_v29, 0.0  ;;  %2208 = vpow2.f32 %v1248_v27 }
 0x1ec   :  { %v2199_v36 = vpop.eup %2198  ;;  %v1287_v42 = vmul.f32 1.442695, %v1285_v28  ;;  %v1328_v43 = vmul.f32 1.442695, %v1325_v30  ;;  %v1324_v44 = vmul.f32 50.0, %v1322_v31  ;;  %v1361_v45 = vsub.f32 0.0, %v1359_v32 }
 0x1ed   :  { %v2201_v39 = vpop.eup %2200  ;;  %v1398_v46 = vmul.f32 %v1937_v8, %v1937_v8  ;;  %v1364_v47 = vmul.f32 50.0, %v1362_v33  ;;  %v1401_v48 = vsub.f32 0.0, %v1399_v34  ;;  %v1438_v49 = vmul.f32 %v1940_v35, %v1940_v35 }
 0x1ee   :  { %1100 = vadd.xlane.f32.xlu1 %v1099_v6  ;;  %v1942_v50 = vadd.f32 -0.15, %v2504_v56  ;;  %2210 = vpow2.f32 %v1289_v37  ;;  %v1437_v51 = vmul.f32 %v1939_v38, %v1939_v38  ;;  %v1941_v52 = vadd.f32 -0.15, %v2506_v18 }
 0x1ef   :  { %1097 = vadd.xlane.f32.xlu0 %v1096_v9  ;;  %v1177_v54 = vsel %vm1052_vm15, %v2199_v36, 0.0  ;;  %v1174_v55 = vsel %vm1052_vm15, %v2201_v39, 0.0  ;;  %2212 = vpow2.f32 %v1287_v42  ;;  %v1326_v58 = vmul.f32 1.442695, %v1324_v44 }
 0x1f0   :  { %v2203_v53 = vpop.eup %2202  ;;  %2214 = vpow2.f32 %v1328_v43  ;;  %v1363_v59 = vmul.f32 50.0, %v1361_v45  ;;  %v1400_v60 = vsub.f32 0.0, %v1398_v46  ;;  %v1367_v61 = vmul.f32 1.442695, %v1364_v47 }
 0x1f1   :  { %v2205_v57 = vpop.eup %2204  ;;  %v1403_v62 = vmul.f32 50.0, %v1401_v48  ;;  %v1440_v19 = vsub.f32 0.0, %v1438_v49  ;;  %v1477_v63 = vmul.f32 %v1942_v50, %v1942_v50  ;;  %v1439_v3 = vsub.f32 0.0, %v1437_v51 }
 0x1f2   :  { %1139 = vadd.xlane.f32.xlu1 %v1138_v40  ;;  %v1476_v4 = vmul.f32 %v1941_v52, %v1941_v52  ;;  %v1216_v5 = vsel %vm1052_vm15, %v2203_v53, 0.0  ;;  %v1213_v7 = vsel %vm1052_vm15, %v2205_v57, 0.0  ;;  %v1944_v10 = vadd.f32 -0.25, %v2504_v56 }
 0x1f3   :  { %1136 = vadd.xlane.f32.xlu0 %v1135_v41  ;;  %2216 = vpow2.f32 %v1326_v58  ;;  %v1365_v12 = vmul.f32 1.442695, %v1363_v59  ;;  %v1402_v13 = vmul.f32 50.0, %v1400_v60  ;;  %v1943_v14 = vadd.f32 -0.25, %v2506_v18 }
 0x1f4   :  { %v2207_v11 = vpop.eup %2206  ;;  %2218 = vpow2.f32 %v1367_v61  ;;  %v1406_v16 = vmul.f32 1.442695, %v1403_v62  ;;  %v1442_v17 = vmul.f32 50.0, %v1440_v19  ;;  %v1479_v20 = vsub.f32 0.0, %v1477_v63 }
 0x1f5   :  { %v2209_v15 = vpop.eup %2208  ;;  %v1441_v0 = vmul.f32 50.0, %v1439_v3  ;;  %v1478_v1 = vsub.f32 0.0, %v1476_v4  ;;  %v1255_v21 = vsel %vm1052_vm15, %v2207_v11, 0.0  ;;  %v1516_v22 = vmul.f32 %v1944_v10, %v1944_v10 }
 0x1f6   :  { %1178 = vadd.xlane.f32.xlu1 %v1177_v54  ;;  %v1946_v23 = vadd.f32 -0.35, %v2504_v56  ;;  %2220 = vpow2.f32 %v1365_v12  ;;  %v1404_v25 = vmul.f32 1.442695, %v1402_v13  ;;  %v1515_v26 = vmul.f32 %v1943_v14, %v1943_v14 }
 0x1f7   :  { %1175 = vadd.xlane.f32.xlu0 %v1174_v55  ;;  %v1945_v2 = vadd.f32 -0.35, %v2506_v18  ;;  %v1252_v27 = vsel %vm1052_vm15, %v2209_v15, 0.0  ;;  %2222 = vpow2.f32 %v1406_v16  ;;  %v1445_v28 = vmul.f32 1.442695, %v1442_v17 }
 0x1f8   :  { %v2211_v24 = vpop.eup %2210  ;;  %v1481_v29 = vmul.f32 50.0, %v1479_v20  ;;  %v1443_v31 = vmul.f32 1.442695, %v1441_v0  ;;  %v1480_v32 = vmul.f32 50.0, %v1478_v1  ;;  %v1518_v9 = vsub.f32 0.0, %v1516_v22 }
 0x1f9   :  { %v2213_v6 = vpop.eup %2212  ;;  %v1294_v8 = vsel %vm1052_vm15, %v2211_v24, 0.0  ;;  %v1555_v33 = vmul.f32 %v1946_v23, %v1946_v23  ;;  %v1948_v34 = vadd.f32 -0.45, %v2504_v56  ;;  %2224 = vpow2.f32 %v1404_v25 }
 0x1fa   :  { %1217 = vadd.xlane.f32.xlu1 %v1216_v5  ;;  %v2215_v30 = vpop.eup %2214  ;;  %v1517_v35 = vsub.f32 0.0, %v1515_v26  ;;  %v1554_v36 = vmul.f32 %v1945_v2, %v1945_v2  ;;  %v1947_v37 = vadd.f32 -0.45, %v2506_v18  ;;  %v1291_v38 = vsel %vm1052_vm15, %v2213_v6, 0.0 }
 0x1fb   :  { %1214 = vadd.xlane.f32.xlu0 %v1213_v7  ;;  %2226 = vpow2.f32 %v1445_v28  ;;  %v1484_v39 = vmul.f32 1.442695, %v1481_v29  ;;  %v1333_v41 = vsel %vm1052_vm15, %v2215_v30, 0.0  ;;  %v1482_v42 = vmul.f32 1.442695, %v1480_v32 }
 0x1fc   :  { %2228 = vpow2.f32 %v1443_v31  ;;  %v1520_v44 = vmul.f32 50.0, %v1518_v9  ;;  %v1557_v45 = vsub.f32 0.0, %v1555_v33  ;;  %v1594_v46 = vmul.f32 %v1948_v34, %v1948_v34 }
 0x1fd   :  { %v2217_v40 = vpop.eup %2216  ;;  %v1950_v47 = vadd.f32 -0.55, %v2504_v56  ;;  %v1519_v48 = vmul.f32 50.0, %v1517_v35  ;;  %v1556_v49 = vsub.f32 0.0, %v1554_v36  ;;  %v1593_v50 = vmul.f32 %v1947_v37, %v1947_v37 }
 0x1fe   :  { %1256 = vadd.xlane.f32.xlu1 %v1255_v21  ;;  %v2219_v43 = vpop.eup %2218  ;;  %v1949_v51 = vadd.f32 -0.55, %v2506_v18  ;;  %v1330_v52 = vsel %vm1052_vm15, %v2217_v40, 0.0  ;;  %2230 = vpow2.f32 %v1484_v39  ;;  %v1523_v57 = vmul.f32 1.442695, %v1520_v44 }
 0x1ff   :  { %1253 = vadd.xlane.f32.xlu0 %v1252_v27  ;;  %v1372_v54 = vsel %vm1052_vm15, %v2219_v43, 0.0  ;;  %2232 = vpow2.f32 %v1482_v42  ;;  %v1559_v58 = vmul.f32 50.0, %v1557_v45  ;;  %v1596_v59 = vsub.f32 0.0, %v1594_v46 }
 0x200   :  { %v2221_v53 = vpop.eup %2220  ;;  %v1633_v60 = vmul.f32 %v1950_v47, %v1950_v47  ;;  %v1521_v56 = vmul.f32 1.442695, %v1519_v48  ;;  %v1558_v61 = vmul.f32 50.0, %v1556_v49  ;;  %v1595_v62 = vsub.f32 0.0, %v1593_v50 }
 0x201   :  { %v2223_v55 = vpop.eup %2222  ;;  %v1632_v19 = vmul.f32 %v1949_v51, %v1949_v51  ;;  %v1369_v18 = vsel %vm1052_vm15, %v2221_v53, 0.0  ;;  %2234 = vpow2.f32 %v1523_v57  ;;  %v1562_v5 = vmul.f32 1.442695, %v1559_v58 }
 0x202   :  { %1295 = vadd.xlane.f32.xlu1 %v1294_v8  ;;  %v1411_v3 = vsel %vm1052_vm15, %v2223_v55, 0.0  ;;  %v1598_v7 = vmul.f32 50.0, %v1596_v59  ;;  %v1635_v10 = vsub.f32 0.0, %v1633_v60  ;;  %2236 = vpow2.f32 %v1521_v56 }
 0x203   :  { %1292 = vadd.xlane.f32.xlu0 %v1291_v38  ;;  %v2225_v63 = vpop.eup %2224  ;;  %v1560_v12 = vmul.f32 1.442695, %v1558_v61  ;;  %v1597_v13 = vmul.f32 50.0, %v1595_v62  ;;  %v1634_v14 = vsub.f32 0.0, %v1632_v19  ;;  %2238 = vpow2.f32 %v1562_v5 }
 0x204   :  { %v1408_v15 = vsel %vm1052_vm15, %v2225_v63, 0.0  ;;  %v1601_v17 = vmul.f32 1.442695, %v1598_v7  ;;  %v1637_v20 = vmul.f32 50.0, %v1635_v10  ;;  %v1067_v44 = vlaneseq }
 0x205   :  { %v2227_v4 = vpop.eup %2226  ;;  %2240 = vpow2.f32 %v1560_v12  ;;  %v1599_v21 = vmul.f32 1.442695, %v1597_v13  ;;  %v1636_v22 = vmul.f32 50.0, %v1634_v14 }
 0x206   :  { %1334 = vadd.xlane.f32.xlu1 %v1333_v41  ;;  %v2229_v11 = vpop.eup %2228  ;;  %v1450_v1 = vsel %vm1052_vm15, %v2227_v4, 0.0  ;;  %2242 = vpow2.f32 %v1601_v17  ;;  %v1640_v24 = vmul.f32 1.442695, %v1637_v20  ;;  %v1068_v49 = vand.u32 127, %v1067_v44 }
 0x207   :  { %1331 = vadd.xlane.f32.xlu0 %v1330_v52  ;;  %v1447_v23 = vsel %vm1052_vm15, %v2229_v11, 0.0  ;;  %2244 = vpow2.f32 %v1599_v21  ;;  %v1638_v26 = vmul.f32 1.442695, %v1636_v22  ;;  %v1070_v50 = vshrl.u32 %v1067_v44, 7 }
 0x208   :  { %v2231_v16 = vpop.eup %2230  ;;  %2246 = vpow2.f32 %v1640_v24 }
 0x209   :  { %v2233_v0 = vpop.eup %2232  ;;  %v1489_v25 = vsel %vm1052_vm15, %v2231_v16, 0.0  ;;  %2248 = vpow2.f32 %v1638_v26  ;;  %v2592_v55 = vsub.s32 %v1068_v49, %v1070_v50 }
 0x20a   :  { %1373 = vadd.xlane.f32.xlu1 %v1372_v54  ;;  %v1486_v6 = vsel %vm1052_vm15, %v2233_v0, 0.0 }
 0x20b   :  { %1370 = vadd.xlane.f32.xlu0 %v1369_v18  ;;  %v2235_v2 = vpop.eup %2234 }
 0x20c   :  { %v2237_v27 = vpop.eup %2236  ;;  %v1528_v28 = vsel %vm1052_vm15, %v2235_v2, 0.0 }
 0x20d   :  { %v2239_v29 = vpop.eup %2238  ;;  %v1525_v30 = vsel %vm1052_vm15, %v2237_v27, 0.0 }
 0x20e   :  { %1412 = vadd.xlane.f32.xlu1 %v1411_v3  ;;  %v1567_v32 = vsel %vm1052_vm15, %v2239_v29, 0.0 }
 0x20f   :  { %1409 = vadd.xlane.f32.xlu0 %v1408_v15  ;;  %v2241_v31 = vpop.eup %2240 }
 0x210   :  { %v2243_v8 = vpop.eup %2242  ;;  %v1564_v9 = vsel %vm1052_vm15, %v2241_v31, 0.0 }
 0x211   :  { %v2245_v33 = vpop.eup %2244  ;;  %v1606_v34 = vsel %vm1052_vm15, %v2243_v8, 0.0 }
 0x212   :  { %1451 = vadd.xlane.f32.xlu1 %v1450_v1  ;;  %v2247_v35 = vpop.eup %2246  ;;  %v1603_v36 = vsel %vm1052_vm15, %v2245_v33, 0.0 }
 0x213   :  { %1448 = vadd.xlane.f32.xlu0 %v1447_v23  ;;  %v2249_v37 = vpop.eup %2248  ;;  %v1645_v38 = vsel %vm1052_vm15, %v2247_v35, 0.0 }
 0x214   :  { %v1642_v39 = vsel %vm1052_vm15, %v2249_v37, 0.0 }
 0x216   :  { %1490 = vadd.xlane.f32.xlu1 %v1489_v25 }
 0x217   :  { %1487 = vadd.xlane.f32.xlu0 %v1486_v6 }
 0x21a   :  { %1529 = vadd.xlane.f32.xlu1 %v1528_v28 }
 0x21b   :  { %1526 = vadd.xlane.f32.xlu0 %v1525_v30 }
 0x21e   :  { %1568 = vadd.xlane.f32.xlu1 %v1567_v32 }
 0x21f   :  { %1565 = vadd.xlane.f32.xlu0 %v1564_v9 }
 0x222   :  { %1607 = vadd.xlane.f32.xlu1 %v1606_v34 }
 0x223   :  { %1604 = vadd.xlane.f32.xlu0 %v1603_v36 }
 0x226   :  { %1646 = vadd.xlane.f32.xlu1 %v1645_v38 }
 0x227   :  { %1643 = vadd.xlane.f32.xlu0 %v1642_v39 }
 0x263   :  { %v1686_v40 = vpop.xlane.xlu1 %1685 }
 0x264   :  { %v1688_v41 = vadd.f32 1.0, %v1686_v40  ;;  %v1683_v42 = vpop.xlane.xlu0 %1682 }
 0x265   :  { %v1687_v43 = vadd.f32 1.0, %v1683_v42 }
 0x266   :  { %2250 = vlog2.f32 %v1688_v41 }
 0x267   :  { %2252 = vlog2.f32 %v1687_v43  ;;  %v1725_v45 = vpop.xlane.xlu1 %1724 }
 0x268   :  { %v1727_v46 = vadd.f32 1.0, %v1725_v45  ;;  %v1722_v47 = vpop.xlane.xlu0 %1721 }
 0x269   :  { %v1726_v48 = vadd.f32 1.0, %v1722_v47 }
 0x26a   :  { %2254 = vlog2.f32 %v1727_v46 }
 0x26b   :  { %2256 = vlog2.f32 %v1726_v48  ;;  %v1764_v51 = vpop.xlane.xlu1 %1763 }
 0x26c   :  { %v1766_v52 = vadd.f32 1.0, %v1764_v51  ;;  %v1761_v53 = vpop.xlane.xlu0 %1760 }
 0x26d   :  { %v1765_v54 = vadd.f32 1.0, %v1761_v53 }
 0x26e   :  { %2258 = vlog2.f32 %v1766_v52 }
 0x26f   :  { %2260 = vlog2.f32 %v1765_v54  ;;  %v1803_v57 = vpop.xlane.xlu1 %1802 }
 0x270   :  { %v2251_v58 = vpop.eup %2250  ;;  %v1805_v59 = vadd.f32 1.0, %v1803_v57  ;;  %v1800_v60 = vpop.xlane.xlu0 %1799 }
 0x271   :  { %v2253_v56 = vpop.eup %2252  ;;  %v1692_v61 = vmul.f32 0.6931472, %v2251_v58  ;;  %v1804_v62 = vadd.f32 1.0, %v1800_v60 }
 0x272   :  { %v1690_v19 = vmul.f32 0.6931472, %v2253_v56  ;;  %2262 = vlog2.f32 %v1805_v59 }
 0x273   :  { %v1702_v18 = vrot.slane %v1692_v61, %v2592_v55  ;;  %2264 = vlog2.f32 %v1804_v62  ;;  %v1842_v63 = vpop.xlane.xlu1 %1841 }
 0x274   :  { %v2255_v3 = vpop.eup %2254  ;;  %v1698_v4 = vrot.slane %v1690_v19, %v2592_v55  ;;  %v1844_v5 = vadd.f32 1.0, %v1842_v63  ;;  %v1839_v7 = vpop.xlane.xlu0 %1838 }
 0x275   :  { %v2257_v10 = vpop.eup %2256  ;;  %v1731_v11 = vmul.f32 0.6931472, %v2255_v3  ;;  %v1843_v12 = vadd.f32 1.0, %v1839_v7 }
 0x276   :  { %v1729_v13 = vmul.f32 0.6931472, %v2257_v10  ;;  %2266 = vlog2.f32 %v1844_v5  ;;  %v1703_v14 = vsel %vm1077_vm0, %v1702_v18, %v1698_v4 }
 0x277   :  { %v1741_v15 = vrot.slane %v1731_v11, %v2592_v55  ;;  %2268 = vlog2.f32 %v1843_v12  ;;  %v1058_v16 = vpop.xlane.xlu1 %1057  ;;  %v1705_v17 = vsel %vm1080_vm1, %v1703_v14, 0.0 }
 0x278   :  { %v2259_v20 = vpop.eup %2258  ;;  %v1737_v0 = vrot.slane %v1729_v13, %v2592_v55  ;;  %v1060_v1 = vadd.f32 1.0, %v1058_v16  ;;  %1706 = vadd.xlane.f32.xlu0 %v1705_v17  ;;  %v1055_v21 = vpop.xlane.xlu0 %1054 }
 0x279   :  { %v2261_v22 = vpop.eup %2260  ;;  %v1770_v23 = vmul.f32 0.6931472, %v2259_v20  ;;  %v1059_v24 = vadd.f32 1.0, %v1055_v21 }
 0x27a   :  { %v1768_v25 = vmul.f32 0.6931472, %v2261_v22  ;;  %2270 = vlog2.f32 %v1060_v1  ;;  %v1742_v26 = vsel %vm1077_vm0, %v1741_v15, %v1737_v0 }
 0x27b   :  { %v1780_v2 = vrot.slane %v1770_v23, %v2592_v55  ;;  %2272 = vlog2.f32 %v1059_v24  ;;  %v1101_v6 = vpop.xlane.xlu1 %1100  ;;  %v1744_v27 = vsel %vm1080_vm1, %v1742_v26, 0.0 }
 0x27c   :  { %v2263_v28 = vpop.eup %2262  ;;  %v1776_v29 = vrot.slane %v1768_v25, %v2592_v55  ;;  %v1103_v30 = vadd.f32 1.0, %v1101_v6  ;;  %1745 = vadd.xlane.f32.xlu1 %v1744_v27  ;;  %v1098_v31 = vpop.xlane.xlu0 %1097 }
 0x27d   :  { %v2265_v32 = vpop.eup %2264  ;;  %v1809_v8 = vmul.f32 0.6931472, %v2263_v28  ;;  %v1102_v9 = vadd.f32 1.0, %v1098_v31 }
 0x27e   :  { %v1807_v33 = vmul.f32 0.6931472, %v2265_v32  ;;  %2274 = vlog2.f32 %v1103_v30  ;;  %v1781_v34 = vsel %vm1077_vm0, %v1780_v2, %v1776_v29 }
 0x27f   :  { %v1819_v35 = vrot.slane %v1809_v8, %v2592_v55  ;;  %2276 = vlog2.f32 %v1102_v9  ;;  %v1140_v36 = vpop.xlane.xlu1 %1139  ;;  %v1783_v37 = vsel %vm1080_vm1, %v1781_v34, 0.0 }
 0x280   :  { %v2267_v38 = vpop.eup %2266  ;;  %v1815_v39 = vrot.slane %v1807_v33, %v2592_v55  ;;  %v1142_v40 = vadd.f32 1.0, %v1140_v36  ;;  %1784 = vadd.xlane.f32.xlu0 %v1783_v37  ;;  %v1137_v41 = vpop.xlane.xlu0 %1136 }
 0x281   :  { %v2269_v42 = vpop.eup %2268  ;;  %v1848_v43 = vmul.f32 0.6931472, %v2267_v38  ;;  %v1141_v44 = vadd.f32 1.0, %v1137_v41 }
 0x282   :  { %v1846_v45 = vmul.f32 0.6931472, %v2269_v42  ;;  %2278 = vlog2.f32 %v1142_v40  ;;  %v1820_v46 = vsel %vm1077_vm0, %v1819_v35, %v1815_v39 }
 0x283   :  { %v1858_v47 = vrot.slane %v1848_v43, %v2592_v55  ;;  %2280 = vlog2.f32 %v1141_v44  ;;  %v1179_v48 = vpop.xlane.xlu1 %1178  ;;  %v1822_v49 = vsel %vm1080_vm1, %v1820_v46, 0.0 }
 0x284   :  { %v2271_v50 = vpop.eup %2270  ;;  %v1854_v51 = vrot.slane %v1846_v45, %v2592_v55  ;;  %v1181_v52 = vadd.f32 1.0, %v1179_v48  ;;  %1823 = vadd.xlane.f32.xlu1 %v1822_v49  ;;  %v1176_v53 = vpop.xlane.xlu0 %1175 }
 0x285   :  { %v2273_v54 = vpop.eup %2272  ;;  %v1064_v57 = vmul.f32 0.6931472, %v2271_v50  ;;  %v1180_v58 = vadd.f32 1.0, %v1176_v53 }
 0x286   :  { %v1062_v59 = vmul.f32 0.6931472, %v2273_v54  ;;  %2282 = vlog2.f32 %v1181_v52  ;;  %v1859_v60 = vsel %vm1077_vm0, %v1858_v47, %v1854_v51 }
 0x287   :  { %v1076_v56 = vrot.slane %v1064_v57, %v2592_v55  ;;  %2284 = vlog2.f32 %v1180_v58  ;;  %v1218_v61 = vpop.xlane.xlu1 %1217  ;;  %v1861_v62 = vsel %vm1080_vm1, %v1859_v60, 0.0 }
 0x288   :  { %v2275_v19 = vpop.eup %2274  ;;  %v1072_v18 = vrot.slane %v1062_v59, %v2592_v55  ;;  %v1220_v63 = vadd.f32 1.0, %v1218_v61  ;;  %1862 = vadd.xlane.f32.xlu0 %v1861_v62  ;;  %v1215_v3 = vpop.xlane.xlu0 %1214 }
 0x289   :  { %v2277_v4 = vpop.eup %2276  ;;  %v1107_v5 = vmul.f32 0.6931472, %v2275_v19  ;;  %v1219_v7 = vadd.f32 1.0, %v1215_v3 }
 0x28a   :  { %v1105_v10 = vmul.f32 0.6931472, %v2277_v4  ;;  %2286 = vlog2.f32 %v1220_v63  ;;  %v1078_v11 = vsel %vm1077_vm0, %v1076_v56, %v1072_v18 }
 0x28b   :  { %v1117_v12 = vrot.slane %v1107_v5, %v2592_v55  ;;  %2288 = vlog2.f32 %v1219_v7  ;;  %v1257_v13 = vpop.xlane.xlu1 %1256  ;;  %v1081_v14 = vsel %vm1080_vm1, %v1078_v11, 0.0 }
 0x28c   :  { %v2279_v15 = vpop.eup %2278  ;;  %v1113_v16 = vrot.slane %v1105_v10, %v2592_v55  ;;  %v1259_v17 = vadd.f32 1.0, %v1257_v13  ;;  %1082 = vadd.xlane.f32.xlu1 %v1081_v14  ;;  %v1254_v20 = vpop.xlane.xlu0 %1253 }
 0x28d   :  { %v2281_v0 = vpop.eup %2280  ;;  %v1146_v1 = vmul.f32 0.6931472, %v2279_v15  ;;  %v1258_v21 = vadd.f32 1.0, %v1254_v20 }
 0x28e   :  { %v1144_v22 = vmul.f32 0.6931472, %v2281_v0  ;;  %2290 = vlog2.f32 %v1259_v17  ;;  %v1118_v23 = vsel %vm1077_vm0, %v1117_v12, %v1113_v16 }
 0x28f   :  { %v1156_v24 = vrot.slane %v1146_v1, %v2592_v55  ;;  %2292 = vlog2.f32 %v1258_v21  ;;  %v1296_v25 = vpop.xlane.xlu1 %1295  ;;  %v1120_v26 = vsel %vm1080_vm1, %v1118_v23, 0.0 }
 0x290   :  { %v2283_v2 = vpop.eup %2282  ;;  %v1152_v6 = vrot.slane %v1144_v22, %v2592_v55  ;;  %v1298_v27 = vadd.f32 1.0, %v1296_v25  ;;  %1121 = vadd.xlane.f32.xlu0 %v1120_v26  ;;  %v1293_v28 = vpop.xlane.xlu0 %1292 }
 0x291   :  { %v2285_v29 = vpop.eup %2284  ;;  %v1185_v30 = vmul.f32 0.6931472, %v2283_v2  ;;  %v1297_v31 = vadd.f32 1.0, %v1293_v28 }
 0x292   :  { %v1183_v32 = vmul.f32 0.6931472, %v2285_v29  ;;  %2294 = vlog2.f32 %v1298_v27  ;;  %v1157_v8 = vsel %vm1077_vm0, %v1156_v24, %v1152_v6 }
 0x293   :  { %v1195_v9 = vrot.slane %v1185_v30, %v2592_v55  ;;  %2296 = vlog2.f32 %v1297_v31  ;;  %v1335_v33 = vpop.xlane.xlu1 %1334  ;;  %v1159_v34 = vsel %vm1080_vm1, %v1157_v8, 0.0 }
 0x294   :  { %v2287_v35 = vpop.eup %2286  ;;  %v1191_v36 = vrot.slane %v1183_v32, %v2592_v55  ;;  %v1337_v37 = vadd.f32 1.0, %v1335_v33  ;;  %1160 = vadd.xlane.f32.xlu1 %v1159_v34  ;;  %v1332_v38 = vpop.xlane.xlu0 %1331 }
 0x295   :  { %v2289_v39 = vpop.eup %2288  ;;  %v1224_v40 = vmul.f32 0.6931472, %v2287_v35  ;;  %v1336_v41 = vadd.f32 1.0, %v1332_v38 }
 0x296   :  { %v1222_v42 = vmul.f32 0.6931472, %v2289_v39  ;;  %2298 = vlog2.f32 %v1337_v37  ;;  %v1196_v43 = vsel %vm1077_vm0, %v1195_v9, %v1191_v36 }
 0x297   :  { %v1234_v44 = vrot.slane %v1224_v40, %v2592_v55  ;;  %2300 = vlog2.f32 %v1336_v41  ;;  %v1374_v45 = vpop.xlane.xlu1 %1373  ;;  %v1198_v46 = vsel %vm1080_vm1, %v1196_v43, 0.0 }
 0x298   :  { %v2291_v47 = vpop.eup %2290  ;;  %v1230_v48 = vrot.slane %v1222_v42, %v2592_v55  ;;  %v1376_v49 = vadd.f32 1.0, %v1374_v45  ;;  %1199 = vadd.xlane.f32.xlu0 %v1198_v46  ;;  %v1371_v50 = vpop.xlane.xlu0 %1370 }
 0x299   :  { %v2293_v51 = vpop.eup %2292  ;;  %v1263_v52 = vmul.f32 0.6931472, %v2291_v47  ;;  %v1375_v53 = vadd.f32 1.0, %v1371_v50 }
 0x29a   :  { %v1261_v54 = vmul.f32 0.6931472, %v2293_v51  ;;  %2302 = vlog2.f32 %v1376_v49  ;;  %v1235_v57 = vsel %vm1077_vm0, %v1234_v44, %v1230_v48 }
 0x29b   :  { %v1273_v58 = vrot.slane %v1263_v52, %v2592_v55  ;;  %2304 = vlog2.f32 %v1375_v53  ;;  %v1413_v59 = vpop.xlane.xlu1 %1412  ;;  %v1237_v60 = vsel %vm1080_vm1, %v1235_v57, 0.0 }
 0x29c   :  { %v2295_v56 = vpop.eup %2294  ;;  %v1269_v61 = vrot.slane %v1261_v54, %v2592_v55  ;;  %v1415_v62 = vadd.f32 1.0, %v1413_v59  ;;  %1238 = vadd.xlane.f32.xlu1 %v1237_v60  ;;  %v1410_v19 = vpop.xlane.xlu0 %1409 }
 0x29d   :  { %v2297_v18 = vpop.eup %2296  ;;  %v1302_v63 = vmul.f32 0.6931472, %v2295_v56  ;;  %v1414_v3 = vadd.f32 1.0, %v1410_v19 }
 0x29e   :  { %v1300_v4 = vmul.f32 0.6931472, %v2297_v18  ;;  %2306 = vlog2.f32 %v1415_v62  ;;  %v1274_v5 = vsel %vm1077_vm0, %v1273_v58, %v1269_v61 }
 0x29f   :  { %v1312_v7 = vrot.slane %v1302_v63, %v2592_v55  ;;  %2308 = vlog2.f32 %v1414_v3  ;;  %v1452_v10 = vpop.xlane.xlu1 %1451  ;;  %v1276_v11 = vsel %vm1080_vm1, %v1274_v5, 0.0 }
 0x2a0   :  { %v2299_v12 = vpop.eup %2298  ;;  %v1308_v13 = vrot.slane %v1300_v4, %v2592_v55  ;;  %v1454_v14 = vadd.f32 1.0, %v1452_v10  ;;  %1277 = vadd.xlane.f32.xlu0 %v1276_v11  ;;  %v1449_v15 = vpop.xlane.xlu0 %1448 }
 0x2a1   :  { %v2301_v16 = vpop.eup %2300  ;;  %v1341_v17 = vmul.f32 0.6931472, %v2299_v12  ;;  %v1453_v20 = vadd.f32 1.0, %v1449_v15 }
 0x2a2   :  { %v1339_v0 = vmul.f32 0.6931472, %v2301_v16  ;;  %2310 = vlog2.f32 %v1454_v14  ;;  %v1313_v1 = vsel %vm1077_vm0, %v1312_v7, %v1308_v13 }
 0x2a3   :  { %v1351_v21 = vrot.slane %v1341_v17, %v2592_v55  ;;  %2312 = vlog2.f32 %v1453_v20  ;;  %v1491_v22 = vpop.xlane.xlu1 %1490  ;;  %v1315_v23 = vsel %vm1080_vm1, %v1313_v1, 0.0 }
 0x2a4   :  { %v2303_v24 = vpop.eup %2302  ;;  %v1347_v25 = vrot.slane %v1339_v0, %v2592_v55  ;;  %v1493_v26 = vadd.f32 1.0, %v1491_v22  ;;  %1316 = vadd.xlane.f32.xlu1 %v1315_v23  ;;  %v1488_v2 = vpop.xlane.xlu0 %1487 }
 0x2a5   :  { %v2305_v6 = vpop.eup %2304  ;;  %v1380_v27 = vmul.f32 0.6931472, %v2303_v24  ;;  %v1492_v28 = vadd.f32 1.0, %v1488_v2 }
 0x2a6   :  { %v1378_v29 = vmul.f32 0.6931472, %v2305_v6  ;;  %2314 = vlog2.f32 %v1493_v26  ;;  %v1352_v30 = vsel %vm1077_vm0, %v1351_v21, %v1347_v25 }
 0x2a7   :  { %v1390_v31 = vrot.slane %v1380_v27, %v2592_v55  ;;  %2316 = vlog2.f32 %v1492_v28  ;;  %v1530_v32 = vpop.xlane.xlu1 %1529  ;;  %v1354_v8 = vsel %vm1080_vm1, %v1352_v30, 0.0 }
 0x2a8   :  { %v2307_v9 = vpop.eup %2306  ;;  %v1386_v33 = vrot.slane %v1378_v29, %v2592_v55  ;;  %v1532_v34 = vadd.f32 1.0, %v1530_v32  ;;  %1355 = vadd.xlane.f32.xlu0 %v1354_v8  ;;  %v1527_v35 = vpop.xlane.xlu0 %1526 }
 0x2a9   :  { %v2309_v36 = vpop.eup %2308  ;;  %v1419_v37 = vmul.f32 0.6931472, %v2307_v9  ;;  %v1531_v38 = vadd.f32 1.0, %v1527_v35 }
 0x2aa   :  { %v1417_v39 = vmul.f32 0.6931472, %v2309_v36  ;;  %2318 = vlog2.f32 %v1532_v34  ;;  %v1391_v40 = vsel %vm1077_vm0, %v1390_v31, %v1386_v33 }
 0x2ab   :  { %v1429_v41 = vrot.slane %v1419_v37, %v2592_v55  ;;  %2320 = vlog2.f32 %v1531_v38  ;;  %v1569_v42 = vpop.xlane.xlu1 %1568  ;;  %v1393_v43 = vsel %vm1080_vm1, %v1391_v40, 0.0 }
 0x2ac   :  { %v2311_v44 = vpop.eup %2310  ;;  %v1425_v45 = vrot.slane %v1417_v39, %v2592_v55  ;;  %v1571_v46 = vadd.f32 1.0, %v1569_v42  ;;  %1394 = vadd.xlane.f32.xlu1 %v1393_v43  ;;  %v1566_v47 = vpop.xlane.xlu0 %1565 }
 0x2ad   :  { %v2313_v48 = vpop.eup %2312  ;;  %v1458_v49 = vmul.f32 0.6931472, %v2311_v44  ;;  %v1570_v50 = vadd.f32 1.0, %v1566_v47 }
 0x2ae   :  { %v1456_v51 = vmul.f32 0.6931472, %v2313_v48  ;;  %2322 = vlog2.f32 %v1571_v46  ;;  %v1430_v52 = vsel %vm1077_vm0, %v1429_v41, %v1425_v45 }
 0x2af   :  { %v1468_v53 = vrot.slane %v1458_v49, %v2592_v55  ;;  %2324 = vlog2.f32 %v1570_v50  ;;  %v1608_v54 = vpop.xlane.xlu1 %1607  ;;  %v1432_v57 = vsel %vm1080_vm1, %v1430_v52, 0.0 }
 0x2b0   :  { %v2315_v58 = vpop.eup %2314  ;;  %v1464_v59 = vrot.slane %v1456_v51, %v2592_v55  ;;  %v1610_v60 = vadd.f32 1.0, %v1608_v54  ;;  %1433 = vadd.xlane.f32.xlu0 %v1432_v57  ;;  %v1605_v56 = vpop.xlane.xlu0 %1604 }
 0x2b1   :  { %v2317_v61 = vpop.eup %2316  ;;  %v1497_v62 = vmul.f32 0.6931472, %v2315_v58  ;;  %v1609_v19 = vadd.f32 1.0, %v1605_v56 }
 0x2b2   :  { %v1495_v18 = vmul.f32 0.6931472, %v2317_v61  ;;  %2326 = vlog2.f32 %v1610_v60  ;;  %v1469_v63 = vsel %vm1077_vm0, %v1468_v53, %v1464_v59 }
 0x2b3   :  { %v1507_v3 = vrot.slane %v1497_v62, %v2592_v55  ;;  %2328 = vlog2.f32 %v1609_v19  ;;  %v1647_v4 = vpop.xlane.xlu1 %1646  ;;  %v1471_v5 = vsel %vm1080_vm1, %v1469_v63, 0.0 }
 0x2b4   :  { %v2319_v7 = vpop.eup %2318  ;;  %v1503_v10 = vrot.slane %v1495_v18, %v2592_v55  ;;  %v1649_v11 = vadd.f32 1.0, %v1647_v4  ;;  %1472 = vadd.xlane.f32.xlu1 %v1471_v5  ;;  %v1644_v12 = vpop.xlane.xlu0 %1643 }
 0x2b5   :  { %v2321_v13 = vpop.eup %2320  ;;  %v1536_v14 = vmul.f32 0.6931472, %v2319_v7  ;;  %v1648_v15 = vadd.f32 1.0, %v1644_v12 }
 0x2b6   :  { %v1534_v16 = vmul.f32 0.6931472, %v2321_v13  ;;  %2330 = vlog2.f32 %v1649_v11  ;;  %v1508_v17 = vsel %vm1077_vm0, %v1507_v3, %v1503_v10 }
 0x2b7   :  { %v1546_v20 = vrot.slane %v1536_v14, %v2592_v55  ;;  %2332 = vlog2.f32 %v1648_v15  ;;  %v1510_v0 = vsel %vm1080_vm1, %v1508_v17, 0.0 }
 0x2b8   :  { %v2323_v1 = vpop.eup %2322  ;;  %v1542_v21 = vrot.slane %v1534_v16, %v2592_v55  ;;  %1511 = vadd.xlane.f32.xlu0 %v1510_v0 }
 0x2b9   :  { %v2325_v22 = vpop.eup %2324  ;;  %v1575_v23 = vmul.f32 0.6931472, %v2323_v1 }
 0x2ba   :  { %v1573_v24 = vmul.f32 0.6931472, %v2325_v22  ;;  %v1547_v25 = vsel %vm1077_vm0, %v1546_v20, %v1542_v21 }
 0x2bb   :  { %v1585_v26 = vrot.slane %v1575_v23, %v2592_v55  ;;  %v1549_v2 = vsel %vm1080_vm1, %v1547_v25, 0.0 }
 0x2bc   :  { %v2327_v6 = vpop.eup %2326  ;;  %v1581_v27 = vrot.slane %v1573_v24, %v2592_v55  ;;  %1550 = vadd.xlane.f32.xlu1 %v1549_v2 }
 0x2bd   :  { %v2329_v28 = vpop.eup %2328  ;;  %v1614_v29 = vmul.f32 0.6931472, %v2327_v6 }
 0x2be   :  { %v1612_v30 = vmul.f32 0.6931472, %v2329_v28  ;;  %v1586_v31 = vsel %vm1077_vm0, %v1585_v26, %v1581_v27 }
 0x2bf   :  { %v1624_v32 = vrot.slane %v1614_v29, %v2592_v55  ;;  %v1588_v8 = vsel %vm1080_vm1, %v1586_v31, 0.0 }
 0x2c0   :  { %v2331_v9 = vpop.eup %2330  ;;  %v1620_v33 = vrot.slane %v1612_v30, %v2592_v55  ;;  %1589 = vadd.xlane.f32.xlu0 %v1588_v8 }
 0x2c1   :  { %v2333_v34 = vpop.eup %2332  ;;  %v1653_v35 = vmul.f32 0.6931472, %v2331_v9 }
 0x2c2   :  { %v1651_v36 = vmul.f32 0.6931472, %v2333_v34  ;;  %v1625_v37 = vsel %vm1077_vm0, %v1624_v32, %v1620_v33 }
 0x2c3   :  { %v1663_v38 = vrot.slane %v1653_v35, %v2592_v55  ;;  %v1627_v39 = vsel %vm1080_vm1, %v1625_v37, 0.0 }
 0x2c4   :  { %v1659_v40 = vrot.slane %v1651_v36, %v2592_v55  ;;  %1628 = vadd.xlane.f32.xlu1 %v1627_v39 }
 0x2c6   :  { %v1664_v41 = vsel %vm1077_vm0, %v1663_v38, %v1659_v40  ;;  %vm1891_vm0 = vcmask 121856  }
 0x2c7   :  { %v1666_v42 = vsel %vm1080_vm1, %v1664_v41, 0.0  ;;  %vm1901_vm1 = vcmask 130048  }
 0x2c8   :  { %1667 = vadd.xlane.f32.xlu0 %v1666_v42 }
 0x305   :  { %v1707_v43 = vpop.xlane.xlu0 %1706 }
 0x309   :  { %v1746_v44 = vpop.xlane.xlu1 %1745 }
 0x30a   :  { %v1893_v47 = vsel %vm1864_vm2, %v1707_v43, %v1746_v44 }
 0x30d   :  { %v1785_v45 = vpop.xlane.xlu0 %1784 }
 0x30e   :  { %v1894_v48 = vsel %vm1866_vm3, %v1893_v47, %v1785_v45 }
 0x311   :  { %v1824_v46 = vpop.xlane.xlu1 %1823 }
 0x312   :  { %v1895_v49 = vsel %vm1868_vm4, %v1894_v48, %v1824_v46 }
 0x315   :  { %v1863_v55 = vpop.xlane.xlu0 %1862 }
 0x316   :  { %v1896_v50 = vsel %vm1870_vm5, %v1895_v49, %v1863_v55 }
 0x317   :  { %1898 = vrot.lane.b32.xlu1 %v1896_v50, %s2361_s0 }
 0x319   :  { %v1083_v51 = vpop.xlane.xlu1 %1082 }
 0x31d   :  { %v1122_v52 = vpop.xlane.xlu0 %1121 }
 0x31e   :  { %v1865_v53 = vsel %vm1864_vm2, %v1083_v51, %v1122_v52  ;;  %vm1903_vm2 = vcmask 164864  }
 0x321   :  { %v1161_v54 = vpop.xlane.xlu1 %1160 }
 0x322   :  { %v1867_v57 = vsel %vm1866_vm3, %v1865_v53, %v1161_v54 }
 0x325   :  { %v1200_v58 = vpop.xlane.xlu0 %1199 }
 0x326   :  { %v1869_v59 = vsel %vm1868_vm4, %v1867_v57, %v1200_v58 }
 0x329   :  { %v1239_v60 = vpop.xlane.xlu1 %1238 }
 0x32a   :  { %v1871_v56 = vsel %vm1870_vm5, %v1869_v59, %v1239_v60 }
 0x32d   :  { %v1278_v61 = vpop.xlane.xlu0 %1277 }
 0x32e   :  { %v1873_v5 = vsel %vm1872_vm6, %v1871_v56, %v1278_v61 }
 0x331   :  { %v1317_v62 = vpop.xlane.xlu1 %1316 }
 0x332   :  { %v1875_v7 = vsel %vm1874_vm7, %v1873_v5, %v1317_v62 }
 0x335   :  { %v1356_v19 = vpop.xlane.xlu0 %1355 }
 0x336   :  { %v1877_v10 = vsel %vm1876_vm8, %v1875_v7, %v1356_v19 }
 0x339   :  { %v1395_v18 = vpop.xlane.xlu1 %1394 }
 0x33a   :  { %v1879_v12 = vsel %vm1878_vm9, %v1877_v10, %v1395_v18 }
 0x33d   :  { %v1434_v63 = vpop.xlane.xlu0 %1433 }
 0x33e   :  { %v1881_v14 = vsel %vm1880_vm10, %v1879_v12, %v1434_v63 }
 0x341   :  { %v1473_v3 = vpop.xlane.xlu1 %1472 }
 0x342   :  { %v1883_v15 = vsel %vm1882_vm11, %v1881_v14, %v1473_v3 }
 0x345   :  { %v1512_v4 = vpop.xlane.xlu0 %1511 }
 0x346   :  { %v1885_v16 = vsel %vm1884_vm12, %v1883_v15, %v1512_v4 }
 0x349   :  { %v1551_v11 = vpop.xlane.xlu1 %1550 }
 0x34a   :  { %v1886_v20 = vsel %vm1052_vm15, %v1885_v16, %v1551_v11 }
 0x34d   :  { %v1590_v13 = vpop.xlane.xlu0 %1589 }
 0x34e   :  { %v1888_v1 = vsel %vm1887_vm13, %v1886_v20, %v1590_v13 }
 0x351   :  { %v1629_v17 = vpop.xlane.xlu1 %1628 }
 0x352   :  { %v1890_v21 = vsel %vm1889_vm14, %v1888_v1, %v1629_v17 }
 0x355   :  { %v1668_v0 = vpop.xlane.xlu0 %1667 }
 0x356   :  { %v1892_v22 = vsel %vm1891_vm0, %v1890_v21, %v1668_v0 }
 0x389   :  { %v1899_v23 = vpop.permute.xlu1 %1898 }
 0x38a   :  { %v1902_v24 = vsel %vm1901_vm1, %v1892_v22, %v1899_v23 }
 0x38b   :  { %1904 = vst.msk [vmem:[#allocation2] sm:$0x3] %vm1903_vm2, %v1902_v24 }
 0x38c   :  { %2345 = shalt.err (!%p2342_p4)
}
 0x38d   :  { %s2346_s25 = scalar_lea.hbm %s2697_s2, 32 }
 0x38e   :  { %p2347_p5 = scmp.ne.s32.totalorder %s2697_s2, %s2346_s25  ;;  %p2350_p6 = scmp.lt.u32.totalorder %s2346_s25, %s2697_s2 }
 0x390   :  { %p2352_p7 = pnand %p2350_p6, %p2347_p5 }
 0x392   :  { %2355 = shalt.err (!%p2352_p7)
}
 0x393   :  { %1914 = dma.vmem_to_hbm [thread:$0]  %s1912_s21, 32, %s2697_s2, [#allocation3]  }
 0x394   :  { %2356 = dma.done.wait [#allocation3], 32  }
 0x395   :  { %2357 = vsyncadd [#allocation3], 4294967264 }
 0x396   :  { %1918 = vsyncpa [#allocation3], 1 }

</bundles_post_ra>
